<compile_context>
chip_gen: v7x
topology: tpu7x:2x2x1
jax: 0.10.0
libtpu: 0.0.40
codegen_flags: <defaults>
</compile_context>

<pallas_src>
import math
import jax
import jax.numpy as jnp
from jax.experimental import pallas as pl
from jax.experimental.pallas import tpu as pltpu

HIDDEN1_UNITS = 300
HIDDEN2_UNITS = 600

LANE = 128


def _round_up(n, m):
    return ((n + m - 1) // m) * m


def critic_kernel(x_ref, a_ref,
                  w0_ref, b0_ref, w1_ref, b1_ref, w2_ref, b2_ref,
                  w3_ref, b3_ref, w4_ref, b4_ref,
                  out_ref):
    # Activations cast to bf16 on the MXU input side; accumulate in f32.
    x = x_ref[...].astype(jnp.bfloat16)
    a = a_ref[...].astype(jnp.bfloat16)

    # h0 + relu  (state -> 384 padded)
    w = jnp.dot(x, w0_ref[...], preferred_element_type=jnp.float32) + b0_ref[...]
    w = jnp.maximum(w, 0.0)

    # h1 + relu  (384 -> 640 padded)
    w = jnp.dot(w.astype(jnp.bfloat16), w1_ref[...],
                preferred_element_type=jnp.float32) + b1_ref[...]
    w = jnp.maximum(w, 0.0)

    # h2 + relu  (action branch: action -> 640 padded)
    a1 = jnp.dot(a, w2_ref[...], preferred_element_type=jnp.float32) + b2_ref[...]
    a1 = jnp.maximum(a1, 0.0)

    # merge branches
    h = w + a1

    # h3 + relu  (640 -> 640 padded)
    h = jnp.dot(h.astype(jnp.bfloat16), w3_ref[...],
                preferred_element_type=jnp.float32) + b3_ref[...]
    h = jnp.maximum(h, 0.0)

    # h4 (no activation)  (640 -> action_size)
    v = jnp.dot(h.astype(jnp.bfloat16), w4_ref[...],
                preferred_element_type=jnp.float32) + b4_ref[...]
    out_ref[...] = v.astype(out_ref.dtype)


def prepare_params(p):
    """Zero-pad hidden dims to 128-multiples and cast weight matrices to bf16."""
    h1p = _round_up(HIDDEN1_UNITS, LANE)   # 384
    h2p = _round_up(HIDDEN2_UNITS, LANE)   # 640
    s = p["w0"].shape[0]
    aS = p["w2"].shape[0]
    aO = p["w4"].shape[1]

    def pad(x, shape):
        return jnp.pad(x, [(0, t - c) for c, t in zip(x.shape, shape)])

    return dict(
        w0=pad(p["w0"], (s, h1p)).astype(jnp.bfloat16),   b0=pad(p["b0"], (1, h1p)),
        w1=pad(p["w1"], (h1p, h2p)).astype(jnp.bfloat16), b1=pad(p["b1"], (1, h2p)),
        w2=pad(p["w2"], (aS, h2p)).astype(jnp.bfloat16),  b2=pad(p["b2"], (1, h2p)),
        w3=pad(p["w3"], (h2p, h2p)).astype(jnp.bfloat16), b3=pad(p["b3"], (1, h2p)),
        w4=pad(p["w4"], (h2p, aO)).astype(jnp.bfloat16),  b4=p["b4"],
    )


def critic_forward(x, a, padded_params, *, batch_block=128):
    """x: (B, state_size) f32, a: (B, action_size) f32 -> (B, action_size) f32."""
    B = x.shape[0]
    state_size = x.shape[1]
    action_size = a.shape[1]
    out_size = padded_params["w4"].shape[1]

    # Pick a batch tile (multiple of 8, capped) and pad the batch to it.
    tb = min(batch_block, _round_up(B, 8))
    bp = _round_up(B, tb)
    if bp != B:
        x = jnp.pad(x, ((0, bp - B), (0, 0)))
        a = jnp.pad(a, ((0, bp - B), (0, 0)))

    p = padded_params
    weight_args = (p["w0"], p["b0"], p["w1"], p["b1"], p["w2"], p["b2"],
                   p["w3"], p["b3"], p["w4"], p["b4"])

    # Weights / biases: same block every grid step -> stay VMEM-resident.
    weight_specs = [pl.BlockSpec(w.shape, lambda i: (0, 0)) for w in weight_args]

    h1p = p["w0"].shape[1]
    h2p = p["w1"].shape[1]
    flops = 2 * bp * (state_size * h1p + h1p * h2p + action_size * h2p
                      + h2p * h2p + h2p * out_size)
    bytes_accessed = sum(int(w.size) * w.dtype.itemsize for w in weight_args)
    bytes_accessed += (x.size + a.size + bp * out_size) * 4

    out = pl.pallas_call(
        critic_kernel,
        out_shape=jax.ShapeDtypeStruct((bp, out_size), jnp.float32),
        grid_spec=pltpu.PrefetchScalarGridSpec(
            num_scalar_prefetch=0,
            grid=(bp // tb,),
            in_specs=[pl.BlockSpec((tb, state_size), lambda i: (i, 0)),
                      pl.BlockSpec((tb, action_size), lambda i: (i, 0))]
                     + weight_specs,
            out_specs=pl.BlockSpec((tb, out_size), lambda i: (i, 0)),
        ),
        compiler_params=pltpu.CompilerParams(
            dimension_semantics=("parallel",)),
        cost_estimate=pl.CostEstimate(flops=flops, transcendentals=0,
                                      bytes_accessed=bytes_accessed),
    )(x, a, *weight_args)

    return out[:B]


def init_linear(key, fan_in, fan_out):
    # PyTorch nn.Linear default init: U(-1/sqrt(fan_in), 1/sqrt(fan_in))
    kw, kb = jax.random.split(key)
    bound = 1.0 / math.sqrt(fan_in)
    w = jax.random.uniform(kw, (fan_in, fan_out), jnp.float32, -bound, bound)
    b = jax.random.uniform(kb, (1, fan_out), jnp.float32, -bound, bound)
    return w, b


def make_params(key, state_size, action_size):
    keys = jax.random.split(key, 5)
    w0, b0 = init_linear(keys[0], state_size, HIDDEN1_UNITS)
    w1, b1 = init_linear(keys[1], HIDDEN1_UNITS, HIDDEN2_UNITS)
    w2, b2 = init_linear(keys[2], action_size, HIDDEN2_UNITS)
    w3, b3 = init_linear(keys[3], HIDDEN2_UNITS, HIDDEN2_UNITS)
    w4, b4 = init_linear(keys[4], HIDDEN2_UNITS, action_size)
    return dict(w0=w0, b0=b0, w1=w1, b1=b1, w2=w2, b2=b2,
                w3=w3, b3=b3, w4=w4, b4=b4)


def critic_reference(x, a, p):
    w = jax.nn.relu(x @ p["w0"] + p["b0"])
    w = jax.nn.relu(w @ p["w1"] + p["b1"])
    a1 = jax.nn.relu(a @ p["w2"] + p["b2"])
    h = w + a1
    h = jax.nn.relu(h @ p["w3"] + p["b3"])
    return h @ p["w4"] + p["b4"]


if __name__ == "__main__":
    key = jax.random.PRNGKey(0)
    k_p, k_x, k_a = jax.random.split(key, 3)

    batch = 8
    state_size = 32
    action_size = 16

    params = make_params(k_p, state_size, action_size)
    padded = prepare_params(params)

    x = jax.random.normal(k_x, (batch, state_size), jnp.float32)
    a = jax.random.normal(k_a, (batch, action_size), jnp.float32)

    v = critic_forward(x, a, padded)
    v = jax.block_until_ready(v)

    v_ref = critic_reference(x, a, params)  # f32 reference (unpadded weights)
    assert v.shape == (batch, action_size)
    # bf16 weights -> loosened tolerance vs the f32 reference.
    assert jnp.allclose(v, v_ref, atol=5e-2, rtol=5e-2), (
        float(jnp.max(jnp.abs(v - v_ref))))

    print("KERNEL_OK")
</pallas_src>

<mosaic_0001>
module attributes {stable_mosaic.version = 11 : i64} {
  func.func @critic_kernel(%arg0: i32, %arg1: memref<8x32xf32, #tpu.memory_space<vmem>>, %arg2: memref<8x16xf32, #tpu.memory_space<vmem>>, %arg3: memref<32x384xbf16, #tpu.memory_space<vmem>>, %arg4: memref<1x384xf32, #tpu.memory_space<vmem>>, %arg5: memref<384x640xbf16, #tpu.memory_space<vmem>>, %arg6: memref<1x640xf32, #tpu.memory_space<vmem>>, %arg7: memref<16x640xbf16, #tpu.memory_space<vmem>>, %arg8: memref<1x640xf32, #tpu.memory_space<vmem>>, %arg9: memref<640x640xbf16, #tpu.memory_space<vmem>>, %arg10: memref<1x640xf32, #tpu.memory_space<vmem>>, %arg11: memref<640x16xbf16, #tpu.memory_space<vmem>>, %arg12: memref<1x16xf32, #tpu.memory_space<vmem>>, %arg13: memref<8x16xf32, #tpu.memory_space<vmem>>) attributes {dimension_semantics = [#tpu.dimension_semantics<parallel>], iteration_bounds = array<i64: 1>, scalar_prefetch = 0 : i64, scratch_operands = 0 : i64, tpu.core_type = #tpu.core_type<tc>, window_params = [{transform_indices = @transform_0, window_bounds = array<i64: 8, 32>}, {transform_indices = @transform_1, window_bounds = array<i64: 8, 16>}, {pipeline_mode = #tpu.pipeline_mode<synchronous>, transform_indices = @transform_2, window_bounds = array<i64: 32, 384>}, {pipeline_mode = #tpu.pipeline_mode<synchronous>, transform_indices = @transform_3, window_bounds = array<i64: 1, 384>}, {pipeline_mode = #tpu.pipeline_mode<synchronous>, transform_indices = @transform_4, window_bounds = array<i64: 384, 640>}, {pipeline_mode = #tpu.pipeline_mode<synchronous>, transform_indices = @transform_5, window_bounds = array<i64: 1, 640>}, {pipeline_mode = #tpu.pipeline_mode<synchronous>, transform_indices = @transform_6, window_bounds = array<i64: 16, 640>}, {pipeline_mode = #tpu.pipeline_mode<synchronous>, transform_indices = @transform_7, window_bounds = array<i64: 1, 640>}, {pipeline_mode = #tpu.pipeline_mode<synchronous>, transform_indices = @transform_8, window_bounds = array<i64: 640, 640>}, {pipeline_mode = #tpu.pipeline_mode<synchronous>, transform_indices = @transform_9, window_bounds = array<i64: 1, 640>}, {pipeline_mode = #tpu.pipeline_mode<synchronous>, transform_indices = @transform_10, window_bounds = array<i64: 640, 16>}, {pipeline_mode = #tpu.pipeline_mode<synchronous>, transform_indices = @transform_11, window_bounds = array<i64: 1, 16>}, {transform_indices = @transform_12, window_bounds = array<i64: 8, 16>}]} {
    %c0 = arith.constant 0 : index
    %c0_0 = arith.constant 0 : index
    %0 = vector.load %arg1[%c0, %c0_0] : memref<8x32xf32, #tpu.memory_space<vmem>>, vector<8x32xf32>
    %1 = arith.truncf %0 : vector<8x32xf32> to vector<8x32xbf16>
    %c0_1 = arith.constant 0 : index
    %c0_2 = arith.constant 0 : index
    %2 = vector.load %arg2[%c0_1, %c0_2] : memref<8x16xf32, #tpu.memory_space<vmem>>, vector<8x16xf32>
    %3 = arith.truncf %2 : vector<8x16xf32> to vector<8x16xbf16>
    %c0_3 = arith.constant 0 : index
    %c0_4 = arith.constant 0 : index
    %4 = vector.load %arg3[%c0_3, %c0_4] : memref<32x384xbf16, #tpu.memory_space<vmem>>, vector<32x384xbf16>
    %cst = arith.constant dense<0.000000e+00> : vector<8x384xf32>
    %5 = tpu.matmul %1, %4, %cst {dimension_numbers = #tpu.dot_dimension_numbers<[1], [0], [0], [1], [0, 0, 1, 1], [], []>} : vector<8x32xbf16>, vector<32x384xbf16>, vector<8x384xf32> -> vector<8x384xf32>
    %c0_5 = arith.constant 0 : index
    %c0_6 = arith.constant 0 : index
    %6 = vector.load %arg4[%c0_5, %c0_6] : memref<1x384xf32, #tpu.memory_space<vmem>>, vector<1x384xf32>
    %7 = vector.broadcast %6 : vector<1x384xf32> to vector<8x384xf32>
    %8 = arith.addf %5, %7 : vector<8x384xf32>
    %cst_7 = arith.constant 0.000000e+00 : f32
    %9 = vector.broadcast %cst_7 : f32 to vector<8x384xf32>
    %10 = arith.maximumf %8, %9 : vector<8x384xf32>
    %11 = arith.truncf %10 : vector<8x384xf32> to vector<8x384xbf16>
    %c0_8 = arith.constant 0 : index
    %c0_9 = arith.constant 0 : index
    %12 = vector.load %arg5[%c0_8, %c0_9] : memref<384x640xbf16, #tpu.memory_space<vmem>>, vector<384x640xbf16>
    %cst_10 = arith.constant dense<0.000000e+00> : vector<8x640xf32>
    %13 = tpu.matmul %11, %12, %cst_10 {dimension_numbers = #tpu.dot_dimension_numbers<[1], [0], [0], [1], [0, 0, 1, 1], [], []>} : vector<8x384xbf16>, vector<384x640xbf16>, vector<8x640xf32> -> vector<8x640xf32>
    %c0_11 = arith.constant 0 : index
    %c0_12 = arith.constant 0 : index
    %14 = vector.load %arg6[%c0_11, %c0_12] : memref<1x640xf32, #tpu.memory_space<vmem>>, vector<1x640xf32>
    %15 = vector.broadcast %14 : vector<1x640xf32> to vector<8x640xf32>
    %16 = arith.addf %13, %15 : vector<8x640xf32>
    %cst_13 = arith.constant 0.000000e+00 : f32
    %17 = vector.broadcast %cst_13 : f32 to vector<8x640xf32>
    %18 = arith.maximumf %16, %17 : vector<8x640xf32>
    %c0_14 = arith.constant 0 : index
    %c0_15 = arith.constant 0 : index
    %19 = vector.load %arg7[%c0_14, %c0_15] : memref<16x640xbf16, #tpu.memory_space<vmem>>, vector<16x640xbf16>
    %cst_16 = arith.constant dense<0.000000e+00> : vector<8x640xf32>
    %20 = tpu.matmul %3, %19, %cst_16 {dimension_numbers = #tpu.dot_dimension_numbers<[1], [0], [0], [1], [0, 0, 1, 1], [], []>} : vector<8x16xbf16>, vector<16x640xbf16>, vector<8x640xf32> -> vector<8x640xf32>
    %c0_17 = arith.constant 0 : index
    %c0_18 = arith.constant 0 : index
    %21 = vector.load %arg8[%c0_17, %c0_18] : memref<1x640xf32, #tpu.memory_space<vmem>>, vector<1x640xf32>
    %22 = vector.broadcast %21 : vector<1x640xf32> to vector<8x640xf32>
    %23 = arith.addf %20, %22 : vector<8x640xf32>
    %cst_19 = arith.constant 0.000000e+00 : f32
    %24 = vector.broadcast %cst_19 : f32 to vector<8x640xf32>
    %25 = arith.maximumf %23, %24 : vector<8x640xf32>
    %26 = arith.addf %18, %25 : vector<8x640xf32>
    %27 = arith.truncf %26 : vector<8x640xf32> to vector<8x640xbf16>
    %c0_20 = arith.constant 0 : index
    %c0_21 = arith.constant 0 : index
    %28 = vector.load %arg9[%c0_20, %c0_21] : memref<640x640xbf16, #tpu.memory_space<vmem>>, vector<640x640xbf16>
    %cst_22 = arith.constant dense<0.000000e+00> : vector<8x640xf32>
    %29 = tpu.matmul %27, %28, %cst_22 {dimension_numbers = #tpu.dot_dimension_numbers<[1], [0], [0], [1], [0, 0, 1, 1], [], []>} : vector<8x640xbf16>, vector<640x640xbf16>, vector<8x640xf32> -> vector<8x640xf32>
    %c0_23 = arith.constant 0 : index
    %c0_24 = arith.constant 0 : index
    %30 = vector.load %arg10[%c0_23, %c0_24] : memref<1x640xf32, #tpu.memory_space<vmem>>, vector<1x640xf32>
    %31 = vector.broadcast %30 : vector<1x640xf32> to vector<8x640xf32>
    %32 = arith.addf %29, %31 : vector<8x640xf32>
    %cst_25 = arith.constant 0.000000e+00 : f32
    %33 = vector.broadcast %cst_25 : f32 to vector<8x640xf32>
    %34 = arith.maximumf %32, %33 : vector<8x640xf32>
    %35 = arith.truncf %34 : vector<8x640xf32> to vector<8x640xbf16>
    %c0_26 = arith.constant 0 : index
    %c0_27 = arith.constant 0 : index
    %36 = vector.load %arg11[%c0_26, %c0_27] : memref<640x16xbf16, #tpu.memory_space<vmem>>, vector<640x16xbf16>
    %cst_28 = arith.constant dense<0.000000e+00> : vector<8x16xf32>
    %37 = tpu.matmul %35, %36, %cst_28 {dimension_numbers = #tpu.dot_dimension_numbers<[1], [0], [0], [1], [0, 0, 1, 1], [], []>} : vector<8x640xbf16>, vector<640x16xbf16>, vector<8x16xf32> -> vector<8x16xf32>
    %c0_29 = arith.constant 0 : index
    %c0_30 = arith.constant 0 : index
    %38 = vector.load %arg12[%c0_29, %c0_30] : memref<1x16xf32, #tpu.memory_space<vmem>>, vector<1x16xf32>
    %39 = vector.broadcast %38 : vector<1x16xf32> to vector<8x16xf32>
    %40 = arith.addf %37, %39 : vector<8x16xf32>
    %c0_31 = arith.constant 0 : index
    %c0_32 = arith.constant 0 : index
    %41 = vector.load %arg13[%c0_31, %c0_32] : memref<8x16xf32, #tpu.memory_space<vmem>>, vector<8x16xf32>
    tpu.vector_store %arg13[%c0_31, %c0_32], %40 {strides = array<i32>} : memref<8x16xf32, #tpu.memory_space<vmem>>, vector<8x16xf32>,
    return
  }
  func.func @transform_0(%arg0: i32) -> (i32, i32) {
    %c0_i32 = arith.constant 0 : i32
    %c0_i32_0 = arith.constant 0 : i32
    return %arg0, %c0_i32 : i32, i32
  }
  func.func @transform_1(%arg0: i32) -> (i32, i32) {
    %c0_i32 = arith.constant 0 : i32
    %c0_i32_0 = arith.constant 0 : i32
    return %arg0, %c0_i32 : i32, i32
  }
  func.func @transform_2(%arg0: i32) -> (i32, i32) {
    %c0_i32 = arith.constant 0 : i32
    %c0_i32_0 = arith.constant 0 : i32
    %c0_i32_1 = arith.constant 0 : i32
    return %c0_i32, %c0_i32_0 : i32, i32
  }
  func.func @transform_3(%arg0: i32) -> (i32, i32) {
    %c0_i32 = arith.constant 0 : i32
    %c0_i32_0 = arith.constant 0 : i32
    %c0_i32_1 = arith.constant 0 : i32
    return %c0_i32, %c0_i32_0 : i32, i32
  }
  func.func @transform_4(%arg0: i32) -> (i32, i32) {
    %c0_i32 = arith.constant 0 : i32
    %c0_i32_0 = arith.constant 0 : i32
    %c0_i32_1 = arith.constant 0 : i32
    return %c0_i32, %c0_i32_0 : i32, i32
  }
  func.func @transform_5(%arg0: i32) -> (i32, i32) {
    %c0_i32 = arith.constant 0 : i32
    %c0_i32_0 = arith.constant 0 : i32
    %c0_i32_1 = arith.constant 0 : i32
    return %c0_i32, %c0_i32_0 : i32, i32
  }
  func.func @transform_6(%arg0: i32) -> (i32, i32) {
    %c0_i32 = arith.constant 0 : i32
    %c0_i32_0 = arith.constant 0 : i32
    %c0_i32_1 = arith.constant 0 : i32
    return %c0_i32, %c0_i32_0 : i32, i32
  }
  func.func @transform_7(%arg0: i32) -> (i32, i32) {
    %c0_i32 = arith.constant 0 : i32
    %c0_i32_0 = arith.constant 0 : i32
    %c0_i32_1 = arith.constant 0 : i32
    return %c0_i32, %c0_i32_0 : i32, i32
  }
  func.func @transform_8(%arg0: i32) -> (i32, i32) {
    %c0_i32 = arith.constant 0 : i32
    %c0_i32_0 = arith.constant 0 : i32
    %c0_i32_1 = arith.constant 0 : i32
    return %c0_i32, %c0_i32_0 : i32, i32
  }
  func.func @transform_9(%arg0: i32) -> (i32, i32) {
    %c0_i32 = arith.constant 0 : i32
    %c0_i32_0 = arith.constant 0 : i32
    %c0_i32_1 = arith.constant 0 : i32
    return %c0_i32, %c0_i32_0 : i32, i32
  }
  func.func @transform_10(%arg0: i32) -> (i32, i32) {
    %c0_i32 = arith.constant 0 : i32
    %c0_i32_0 = arith.constant 0 : i32
    %c0_i32_1 = arith.constant 0 : i32
    return %c0_i32, %c0_i32_0 : i32, i32
  }
  func.func @transform_11(%arg0: i32) -> (i32, i32) {
    %c0_i32 = arith.constant 0 : i32
    %c0_i32_0 = arith.constant 0 : i32
    %c0_i32_1 = arith.constant 0 : i32
    return %c0_i32, %c0_i32_0 : i32, i32
  }
  func.func @transform_12(%arg0: i32) -> (i32, i32) {
    %c0_i32 = arith.constant 0 : i32
    %c0_i32_0 = arith.constant 0 : i32
    return %arg0, %c0_i32 : i32, i32
  }
}

</mosaic_0001>

<bundles_post_ra>
// kernel: tpu_custom_call.1
= control target key start
LH: loop header
LB: loop body
LE: loop exit
PB: predicated region body
PF: predicated region fallthrough
CT: control target
= control target key end

     0   :  { %17 = vsyncpa [#allocation3], 0  ;;  %s5248_s0 = inlined_call_operand.vmem [shape: f32[8,32], index: 0, kind: input, shape index: {}]   ;;  %s5249_s1 = inlined_call_operand.vmem [shape: f32[8,16], index: 1, kind: input, shape index: {}]   ;;  %s5250_s2 = inlined_call_operand.vmem [shape: bf16[32,384], index: 2, kind: input, shape index: {}]   ;;  %s5251_s3 = inlined_call_operand.vmem [shape: f32[1,384], index: 3, kind: input, shape index: {}]   ;;  %s5252_s4 = inlined_call_operand.hbm [shape: bf16[384,640], index: 4, kind: input, shape index: {}]   ;;  %s5253_s5 = inlined_call_operand.vmem [shape: f32[1,640], index: 5, kind: input, shape index: {}]   ;;  %s5254_s6 = inlined_call_operand.vmem [shape: bf16[16,640], index: 6, kind: input, shape index: {}]   ;;  %s5255_s7 = inlined_call_operand.vmem [shape: f32[1,640], index: 7, kind: input, shape index: {}]   ;;  %s5256_s8 = inlined_call_operand.hbm [shape: bf16[640,640], index: 8, kind: input, shape index: {}]   ;;  %s5257_s9 = inlined_call_operand.vmem [shape: f32[1,640], index: 9, kind: input, shape index: {}]   ;;  %s5258_s10 = inlined_call_operand.vmem [shape: bf16[640,16], index: 10, kind: input, shape index: {}]   ;;  %s5259_s11 = inlined_call_operand.vmem [shape: f32[1,16], index: 11, kind: input, shape index: {}]   ;;  %s5260_s12 = inlined_call_operand.hbm [shape: f32[8,16], index: 12, kind: output, shape index: {}]  }
   0x1   :  { %18 = vsyncpa [#allocation6], 0 }
   0x2   :  { %19 = vsyncpa [#allocation4], 0  ;;  %s4822_s21 = smov [#allocation2]   ;;  %s4750_s25 = scalar_lea.hbm %s5252_s4, 15360 }
   0x3   :  { %s33_s22 = sshll.u32 %s4822_s21, 4  ;;  %p4751_p0 = scmp.ne.s32.totalorder %s5252_s4, %s4750_s25  ;;  %s34_s22 = int_to_ptr.vmem [resolvable:$true] %s33_s22 }
   0x4   :  { %p4754_p1 = scmp.lt.u32.totalorder %s4750_s25, %s5252_s4 }
   0x6   :  { %p4756_p2 = pnand %p4754_p1, %p4751_p0 }
   0x8   :  { %4759 = shalt.err (!%p4756_p2)
}
   0x9   :  { %s4760_s30 = scalar_lea.vmem %s34_s22, 15360  ;;  %p4765_p4 = scmp.lt.s32.totalorder %s34_s22, %s34_s22 }
   0xa   :  { %p4761_p3 = scmp.ne.s32.totalorder %s34_s22, %s4760_s30  ;;  %p4766_p5 = scmp.lt.s32.totalorder %s4760_s30, %s4760_s30 }
   0xc   :  { %p4767_p6 = por %p4766_p5, %p4765_p4 }
   0xe   :  { %p4768_p7 = pnand %p4767_p6, %p4761_p3 }
  0x10   :  { %4771 = shalt.err (!%p4768_p7)
}
  0x11   :  { %s4823_s13 = smov 320   ;;  %s4824_s14 = smov 20  }
  0x12   :  { %39 = dma.hbm_to_vmem [thread:$0]  %s5252_s4, 15360, %s34_s22, [#allocation3], %s4823_s13, %s4823_s13, %s4824_s14  }
  0x13   :  { %s4825_s17 = smov [#allocation5]   ;;  %s4772_s21 = scalar_lea.hbm %s5256_s8, 25600 }
  0x14   :  { %s51_s18 = sshll.u32 %s4825_s17, 4  ;;  %p4773_p8 = scmp.ne.s32.totalorder %s5256_s8, %s4772_s21  ;;  %s52_s18 = int_to_ptr.vmem [resolvable:$true] %s51_s18 }
  0x15   :  { %p4776_p9 = scmp.lt.u32.totalorder %s4772_s21, %s5256_s8 }
  0x17   :  { %p4778_p10 = pnand %p4776_p9, %p4773_p8 }
  0x19   :  { %4781 = shalt.err (!%p4778_p10)
}
  0x1a   :  { %s4782_s27 = scalar_lea.vmem %s52_s18, 25600  ;;  %p4787_p12 = scmp.lt.s32.totalorder %s52_s18, %s52_s18 }
  0x1b   :  { %p4783_p11 = scmp.ne.s32.totalorder %s52_s18, %s4782_s27  ;;  %p4788_p13 = scmp.lt.s32.totalorder %s4782_s27, %s4782_s27 }
  0x1d   :  { %p4789_p0 = por %p4788_p13, %p4787_p12 }
  0x1f   :  { %p4790_p1 = pnand %p4789_p0, %p4783_p11 }
  0x21   :  { %4793 = shalt.err (!%p4790_p1)
}
  0x22   :  { %57 = dma.hbm_to_vmem [thread:$0]  %s5256_s8, 25600, %s52_s18, [#allocation6], %s4823_s13, %s4823_s13, %s4824_s14  }
  0x23   :  { %4816 = dma.done.wait [#allocation3], 15360  }
  0x24   :  { %4817 = vsyncadd [#allocation3], 4294951936 }
  0x25   :  { %4818 = dma.done.wait [#allocation6], 25600  }
  0x26   :  { %4819 = vsyncadd [#allocation6], 4294941696  ;;  %v4826_v0 = vmov 0   ;;  %v4827_v1 = vmov 0.0   ;;  %vm4828_vm0 = vmmov 0   ;;  %v71_v6 = vld [vmem:[%s5248_s0] sm:$0xff] }
  0x27   :  { %168 = vmatprep.mubr.bf16.mxu0 %v4826_v0  ;;  %4133 = vmatprep.subr.bf16.mxu1 %v4827_v1  ;;  %v4247_v2 = vld [vmem:[%s5250_s2 + $0x4] ss:$12 sps:$4 sm:$0xff]   ;;  %v4249_v3 = vld [vmem:[%s5250_s2] ss:$12 sps:$4 sm:$0xff]   ;;  %v4250_v4 = vld [vmem:[%s5250_s2 + $0x1c] ss:$12 sps:$4 sm:$0xff]   ;;  %v72_v9 = vpack.c.bf16 %v71_v6, %v71_v6 }
  0x28   :  { %4137 = vmatprep.mubr.msk.bf16.mxu1 %vm4828_vm0, %v4827_v1  ;;  %136 = vmatprep.subr.bf16.mxu0 %v4247_v2  ;;  %v4252_v5 = vld [vmem:[%s5250_s2 + $0x18] ss:$12 sps:$4 sm:$0xff]   ;;  %v4253_v7 = vld [vmem:[%s5250_s2 + $0x8] ss:$12 sps:$4 sm:$0xff]   ;;  %v4254_v8 = vld [vmem:[%s5250_s2 + $0x20] ss:$12 sps:$4 sm:$0xff]  }
  0x29   :  { %137 = vmatpush1.bf16.msra.mxu0 %v4249_v3  ;;  %4134 = vmatpush3.bf16.msra.mxu1 %v4253_v7  ;;  %v4257_v10 = vld [vmem:[#allocation2 + $0x4] ss:$20 sps:$4 sm:$0xff]   ;;  %vm132_vm1 = vcmask 261120   ;;  %v4255_v11 = vld [vmem:[#allocation2] ss:$20 sps:$4 sm:$0xff]   ;;  %vm1326_vm2 = vcmask 130048  }
  0x2a   :  { %138 = vmatprep.subr.bf16.mxu0 %v4250_v4  ;;  %4135 = vmatprep.subr.bf16.mxu1 %v4827_v1  ;;  %v4260_v12 = vld [vmem:[#allocation2 + $0xc] ss:$20 sps:$4 sm:$0xff]   ;;  %v4258_v14 = vld [vmem:[#allocation2 + $0x8] ss:$20 sps:$4 sm:$0xff]   ;;  %v4264_v18 = vld [vmem:[#allocation2 + $0x30] ss:$20 sps:$4 sm:$0xff]  }
  0x2b   :  { %v4263_v13 = vld [vmem:[#allocation2 + $0x2c] ss:$20 sps:$4 sm:$0xff]   ;;  %v4266_v15 = vld [vmem:[#allocation2 + $0x34] ss:$20 sps:$4 sm:$0xff]   ;;  %v4272_v19 = vld [vmem:[#allocation2 + $0x5c] ss:$20 sps:$4 sm:$0xff]  }
  0x2c   :  { %v4261_v16 = vld [vmem:[#allocation2 + $0x28] ss:$20 sps:$4 sm:$0xff]   ;;  %v4267_v20 = vld [vmem:[#allocation2 + $0x50] ss:$20 sps:$4 sm:$0xff]   ;;  %v4270_v22 = vld [vmem:[#allocation2 + $0x58] ss:$20 sps:$4 sm:$0xff]  }
  0x2d   :  { %139 = vmatpush1.bf16.msra.mxu0 %v4252_v5  ;;  %4136 = vmatpush3.bf16.msra.mxu1 %v4254_v8  ;;  %v4269_v17 = vld [vmem:[#allocation2 + $0x54] ss:$20 sps:$4 sm:$0xff]   ;;  %v4275_v21 = vld [vmem:[#allocation2 + $0x7c] ss:$20 sps:$4 sm:$0xff]   ;;  %v4278_v23 = vld [vmem:[#allocation2 + $0x84] ss:$20 sps:$4 sm:$0xff]  }
  0x2e   :  { %1018 = vmatprep.subr.bf16.mxu0 %v4257_v10  ;;  %1100 = vmatprep.subr.bf16.mxu1 %v4260_v12  ;;  %v4273_v24 = vld [vmem:[#allocation2 + $0x78] ss:$20 sps:$4 sm:$0xff]   ;;  %v4276_v26 = vld [vmem:[#allocation2 + $0x80] ss:$20 sps:$4 sm:$0xff]   ;;  %v4282_v30 = vld [vmem:[#allocation2 + $0xa8] ss:$20 sps:$4 sm:$0xff]  }
  0x2f   :  { %v4281_v25 = vld [vmem:[#allocation2 + $0xa4] ss:$20 sps:$4 sm:$0xff]   ;;  %v4284_v27 = vld [vmem:[#allocation2 + $0xac] ss:$20 sps:$4 sm:$0xff]   ;;  %v4290_v31 = vld [vmem:[#allocation2 + $0xd4] ss:$20 sps:$4 sm:$0xff]  }
  0x30   :  { %3620 = vmatmul.mubr.msk.bf16.vlgmr.msra.gmra.mrb[0].mxu0 %vm132_vm1, %v72_v9  ;;  %4138 = vmatmul.mubr.msk.bf16.vlgmr.msra.gmra.mrb[0].mxu1 %vm132_vm1, %v72_v9  ;;  %v4279_v28 = vld [vmem:[#allocation2 + $0xa0] ss:$20 sps:$4 sm:$0xff]   ;;  %v4285_v32 = vld [vmem:[#allocation2 + $0xc8] ss:$20 sps:$4 sm:$0xff]   ;;  %v4288_v34 = vld [vmem:[#allocation2 + $0xd0] ss:$20 sps:$4 sm:$0xff]  }
  0x31   :  { %1019 = vmatpush1.bf16.msra.mxu0 %v4255_v11  ;;  %1101 = vmatpush1.bf16.msra.mxu1 %v4258_v14  ;;  %v4287_v29 = vld [vmem:[#allocation2 + $0xcc] ss:$20 sps:$4 sm:$0xff]   ;;  %v4293_v33 = vld [vmem:[#allocation2 + $0xf4] ss:$20 sps:$4 sm:$0xff]   ;;  %v4296_v35 = vld [vmem:[#allocation2 + $0xfc] ss:$20 sps:$4 sm:$0xff]   ;;  %v85_v14 = vlaneseq }
  0x32   :  { %1020 = vmatprep.subr.bf16.mxu0 %v4263_v13  ;;  %1102 = vmatprep.subr.bf16.mxu1 %v4266_v15  ;;  %v4291_v36 = vld [vmem:[#allocation2 + $0xf0] ss:$20 sps:$4 sm:$0xff]   ;;  %v4294_v38 = vld [vmem:[#allocation2 + $0xf8] ss:$20 sps:$4 sm:$0xff]   ;;  %v4300_v42 = vld [vmem:[#allocation2 + $0x120] ss:$20 sps:$4 sm:$0xff]  }
  0x33   :  { %v4299_v37 = vld [vmem:[#allocation2 + $0x11c] ss:$20 sps:$4 sm:$0xff]   ;;  %v4302_v39 = vld [vmem:[#allocation2 + $0x124] ss:$20 sps:$4 sm:$0xff]   ;;  %v4308_v43 = vld [vmem:[#allocation2 + $0x14c] ss:$20 sps:$4 sm:$0xff]  }
  0x34   :  { %v4297_v40 = vld [vmem:[#allocation2 + $0x118] ss:$20 sps:$4 sm:$0xff]   ;;  %v4303_v44 = vld [vmem:[#allocation2 + $0x140] ss:$20 sps:$4 sm:$0xff]   ;;  %v4306_v45 = vld [vmem:[#allocation2 + $0x148] ss:$20 sps:$4 sm:$0xff]  }
  0x35   :  { %1021 = vmatpush1.bf16.msra.mxu0 %v4261_v16  ;;  %1103 = vmatpush1.bf16.msra.mxu1 %v4264_v18  ;;  %v4305_v41 = vld [vmem:[#allocation2 + $0x144] ss:$20 sps:$4 sm:$0xff]   ;;  %v4311_v46 = vld [vmem:[#allocation2 + $0x16c] ss:$20 sps:$4 sm:$0xff]   ;;  %v4309_v47 = vld [vmem:[#allocation2 + $0x168] ss:$20 sps:$4 sm:$0xff]  }
  0x36   :  { %1022 = vmatprep.subr.bf16.mxu0 %v4269_v17  ;;  %1104 = vmatprep.subr.bf16.mxu1 %v4272_v19  ;;  %v4314_v48 = vld [vmem:[#allocation2 + $0x174] ss:$20 sps:$4 sm:$0xff]   ;;  %v4312_v50 = vld [vmem:[#allocation2 + $0x170] ss:$20 sps:$4 sm:$0xff]   ;;  %v4318_v54 = vld [vmem:[#allocation2 + $0x198] ss:$20 sps:$4 sm:$0xff]  }
  0x37   :  { %v4317_v49 = vld [vmem:[#allocation2 + $0x194] ss:$20 sps:$4 sm:$0xff]   ;;  %v4320_v51 = vld [vmem:[#allocation2 + $0x19c] ss:$20 sps:$4 sm:$0xff]   ;;  %v4326_v55 = vld [vmem:[#allocation2 + $0x1c4] ss:$20 sps:$4 sm:$0xff]  }
  0x38   :  { %v4315_v52 = vld [vmem:[#allocation2 + $0x190] ss:$20 sps:$4 sm:$0xff]   ;;  %v4321_v56 = vld [vmem:[#allocation2 + $0x1b8] ss:$20 sps:$4 sm:$0xff]   ;;  %v4324_v58 = vld [vmem:[#allocation2 + $0x1c0] ss:$20 sps:$4 sm:$0xff]  }
  0x39   :  { %1023 = vmatpush1.bf16.msra.mxu0 %v4267_v20  ;;  %1105 = vmatpush1.bf16.msra.mxu1 %v4270_v22  ;;  %v4323_v53 = vld [vmem:[#allocation2 + $0x1bc] ss:$20 sps:$4 sm:$0xff]   ;;  %v4329_v57 = vld [vmem:[#allocation2 + $0x1e4] ss:$20 sps:$4 sm:$0xff]   ;;  %v4332_v59 = vld [vmem:[#allocation2 + $0x1ec] ss:$20 sps:$4 sm:$0xff]  }
  0x3a   :  { %1024 = vmatprep.subr.bf16.mxu0 %v4275_v21  ;;  %1106 = vmatprep.subr.bf16.mxu1 %v4278_v23  ;;  %v4327_v60 = vld [vmem:[#allocation2 + $0x1e0] ss:$20 sps:$4 sm:$0xff]   ;;  %v4330_v62 = vld [vmem:[#allocation2 + $0x1e8] ss:$20 sps:$4 sm:$0xff]   ;;  %v4336_v3 = vld [vmem:[#allocation2 + $0x210] ss:$20 sps:$4 sm:$0xff]  }
  0x3b   :  { %v4335_v61 = vld [vmem:[#allocation2 + $0x20c] ss:$20 sps:$4 sm:$0xff]   ;;  %v4338_v63 = vld [vmem:[#allocation2 + $0x214] ss:$20 sps:$4 sm:$0xff]   ;;  %v4344_v5 = vld [vmem:[#allocation2 + $0x23c] ss:$20 sps:$4 sm:$0xff]  }
  0x3c   :  { %v4333_v2 = vld [vmem:[#allocation2 + $0x208] ss:$20 sps:$4 sm:$0xff]   ;;  %v4339_v6 = vld [vmem:[#allocation2 + $0x230] ss:$20 sps:$4 sm:$0xff]   ;;  %v4342_v7 = vld [vmem:[#allocation2 + $0x238] ss:$20 sps:$4 sm:$0xff]  }
  0x3d   :  { %1025 = vmatpush1.bf16.msra.mxu0 %v4273_v24  ;;  %1107 = vmatpush1.bf16.msra.mxu1 %v4276_v26  ;;  %v4341_v4 = vld [vmem:[#allocation2 + $0x234] ss:$20 sps:$4 sm:$0xff]   ;;  %v4347_v8 = vld [vmem:[#allocation2 + $0x25c] ss:$20 sps:$4 sm:$0xff]   ;;  %v4350_v9 = vld [vmem:[#allocation2 + $0x264] ss:$20 sps:$4 sm:$0xff]  }
  0x3e   :  { %1026 = vmatprep.subr.bf16.mxu0 %v4281_v25  ;;  %1108 = vmatprep.subr.bf16.mxu1 %v4284_v27  ;;  %v4345_v10 = vld [vmem:[#allocation2 + $0x258] ss:$20 sps:$4 sm:$0xff]   ;;  %v4348_v11 = vld [vmem:[#allocation2 + $0x260] ss:$20 sps:$4 sm:$0xff]   ;;  %v4945_v15 = vshrl.u32 %v85_v14, 7 }
  0x3f   :  { %v4353_v12 = vld [vmem:[#allocation2 + $0x284] ss:$20 sps:$4 sm:$0xff]   ;;  %v4356_v13 = vld [vmem:[#allocation2 + $0x28c] ss:$20 sps:$4 sm:$0xff]  }
  0x40   :  { %v4948_v16 = vsub.s32 0, %v4945_v15  ;;  %v4953_v17 = vld [vmem:[%s5251_s3] sm:$0x7]  ;;  %v4956_v18 = vsub.s32 1, %v4945_v15 }
  0x41   :  { %1027 = vmatpush1.bf16.msra.mxu0 %v4279_v28  ;;  %1109 = vmatpush1.bf16.msra.mxu1 %v4282_v30  ;;  %v4405_v14 = vld [vmem:[#allocation2 + $0x1a0] ss:$20 sps:$4 sm:$0xff]  }
  0x42   :  { %1028 = vmatprep.subr.bf16.mxu0 %v4287_v29  ;;  %1110 = vmatprep.subr.bf16.mxu1 %v4290_v31  ;;  %v88_v19 = vrot.slane %v4953_v17, %v4948_v16  ;;  %v92_v20 = vrot.slane %v4953_v17, %v4956_v18 }
  0x45   :  { %1029 = vmatpush1.bf16.msra.mxu0 %v4285_v32  ;;  %1111 = vmatpush1.bf16.msra.mxu1 %v4288_v34  ;;  %v4351_v34 = vld [vmem:[#allocation2 + $0x280] ss:$20 sps:$4 sm:$0xff]  }
  0x46   :  { %1030 = vmatprep.subr.bf16.mxu0 %v4293_v33  ;;  %1112 = vmatprep.subr.bf16.mxu1 %v4296_v35  ;;  %v4354_v35 = vld [vmem:[#allocation2 + $0x288] ss:$20 sps:$4 sm:$0xff]  }
  0x49   :  { %1031 = vmatpush1.bf16.msra.mxu0 %v4291_v36  ;;  %1113 = vmatpush1.bf16.msra.mxu1 %v4294_v38  ;;  %v4362_v38 = vld [vmem:[#allocation2 + $0x2b4] ss:$20 sps:$4 sm:$0xff]  }
  0x4a   :  { %1032 = vmatprep.subr.bf16.mxu0 %v4299_v37  ;;  %1114 = vmatprep.subr.bf16.mxu1 %v4302_v39  ;;  %v4359_v37 = vld [vmem:[#allocation2 + $0x2ac] ss:$20 sps:$4 sm:$0xff]   ;;  %v4357_v39 = vld [vmem:[#allocation2 + $0x2a8] ss:$20 sps:$4 sm:$0xff]  }
  0x4d   :  { %1033 = vmatpush1.bf16.msra.mxu0 %v4297_v40  ;;  %1115 = vmatpush1.bf16.msra.mxu1 %v4300_v42  ;;  %v4360_v40 = vld [vmem:[#allocation2 + $0x2b0] ss:$20 sps:$4 sm:$0xff]  }
  0x4e   :  { %1034 = vmatprep.subr.bf16.mxu0 %v4305_v41  ;;  %1116 = vmatprep.subr.bf16.mxu1 %v4308_v43  ;;  %v4365_v41 = vld [vmem:[#allocation2 + $0x2d4] ss:$20 sps:$4 sm:$0xff]   ;;  %v4368_v42 = vld [vmem:[#allocation2 + $0x2dc] ss:$20 sps:$4 sm:$0xff]  }
  0x4f   :  { %v4363_v43 = vld [vmem:[#allocation2 + $0x2d0] ss:$20 sps:$4 sm:$0xff]  }
  0x51   :  { %1035 = vmatpush1.bf16.msra.mxu0 %v4303_v44  ;;  %1117 = vmatpush1.bf16.msra.mxu1 %v4306_v45  ;;  %v4366_v44 = vld [vmem:[#allocation2 + $0x2d8] ss:$20 sps:$4 sm:$0xff]   ;;  %v4371_v45 = vld [vmem:[#allocation2 + $0x2fc] ss:$20 sps:$4 sm:$0xff]  }
  0x52   :  { %1036 = vmatprep.subr.bf16.mxu0 %v4311_v46  ;;  %1118 = vmatprep.subr.bf16.mxu1 %v4314_v48  ;;  %v4374_v46 = vld [vmem:[#allocation2 + $0x304] ss:$20 sps:$4 sm:$0xff]   ;;  %v4372_v48 = vld [vmem:[#allocation2 + $0x300] ss:$20 sps:$4 sm:$0xff]  }
  0x55   :  { %1037 = vmatpush1.bf16.msra.mxu0 %v4309_v47  ;;  %1119 = vmatpush1.bf16.msra.mxu1 %v4312_v50  ;;  %v4369_v47 = vld [vmem:[#allocation2 + $0x2f8] ss:$20 sps:$4 sm:$0xff]  }
  0x56   :  { %1038 = vmatprep.subr.bf16.mxu0 %v4317_v49  ;;  %1120 = vmatprep.subr.bf16.mxu1 %v4320_v51  ;;  %v4377_v49 = vld [vmem:[#allocation2 + $0x324] ss:$20 sps:$4 sm:$0xff]   ;;  %v4380_v50 = vld [vmem:[#allocation2 + $0x32c] ss:$20 sps:$4 sm:$0xff]   ;;  %v4973_v51 = vsub.s32 2, %v4945_v15 }
  0x59   :  { %1039 = vmatpush1.bf16.msra.mxu0 %v4315_v52  ;;  %1121 = vmatpush1.bf16.msra.mxu1 %v4318_v54  ;;  %v4375_v52 = vld [vmem:[#allocation2 + $0x320] ss:$20 sps:$4 sm:$0xff]  }
  0x5a   :  { %1040 = vmatprep.subr.bf16.mxu0 %v4323_v53  ;;  %1122 = vmatprep.subr.bf16.mxu1 %v4326_v55  ;;  %v4378_v53 = vld [vmem:[#allocation2 + $0x328] ss:$20 sps:$4 sm:$0xff]   ;;  %v4383_v54 = vld [vmem:[#allocation2 + $0x34c] ss:$20 sps:$4 sm:$0xff]  }
  0x5b   :  { %v4386_v55 = vld [vmem:[#allocation2 + $0x354] ss:$20 sps:$4 sm:$0xff]  }
  0x5d   :  { %1041 = vmatpush1.bf16.msra.mxu0 %v4321_v56  ;;  %1123 = vmatpush1.bf16.msra.mxu1 %v4324_v58  ;;  %v96_v56 = vrot.slane %v4953_v17, %v4973_v51  ;;  %v4384_v58 = vld [vmem:[#allocation2 + $0x350] ss:$20 sps:$4 sm:$0xff]   ;;  %v4406_v17 = vld [vmem:[#allocation2 + $0x60] ss:$20 sps:$4 sm:$0xff]  }
  0x5e   :  { %1042 = vmatprep.subr.bf16.mxu0 %v4329_v57  ;;  %1124 = vmatprep.subr.bf16.mxu1 %v4332_v59  ;;  %v4381_v57 = vld [vmem:[#allocation2 + $0x348] ss:$20 sps:$4 sm:$0xff]  }
  0x5f   :  { %v4389_v59 = vld [vmem:[#allocation2 + $0x374] ss:$20 sps:$4 sm:$0xff]  }
  0x61   :  { %1043 = vmatpush1.bf16.msra.mxu0 %v4327_v60  ;;  %1125 = vmatpush1.bf16.msra.mxu1 %v4330_v62  ;;  %v4392_v60 = vld [vmem:[#allocation2 + $0x37c] ss:$20 sps:$4 sm:$0xff]  }
  0x62   :  { %1044 = vmatprep.subr.bf16.mxu0 %v4335_v61  ;;  %1126 = vmatprep.subr.bf16.mxu1 %v4338_v63  ;;  %v4387_v62 = vld [vmem:[#allocation2 + $0x370] ss:$20 sps:$4 sm:$0xff]   ;;  %v4390_v63 = vld [vmem:[#allocation2 + $0x378] ss:$20 sps:$4 sm:$0xff]  }
  0x65   :  { %1045 = vmatpush1.bf16.msra.mxu0 %v4333_v2  ;;  %1127 = vmatpush1.bf16.msra.mxu1 %v4336_v3  ;;  %v4395_v2 = vld [vmem:[#allocation2 + $0x39c] ss:$20 sps:$4 sm:$0xff]   ;;  %v4398_v3 = vld [vmem:[#allocation2 + $0x3a4] ss:$20 sps:$4 sm:$0xff]  }
  0x66   :  { %1046 = vmatprep.subr.bf16.mxu0 %v4341_v4  ;;  %1128 = vmatprep.subr.bf16.mxu1 %v4344_v5  ;;  %v4393_v5 = vld [vmem:[#allocation2 + $0x398] ss:$20 sps:$4 sm:$0xff]  }
  0x69   :  { %1047 = vmatpush1.bf16.msra.mxu0 %v4339_v6  ;;  %1129 = vmatpush1.bf16.msra.mxu1 %v4342_v7  ;;  %v4396_v6 = vld [vmem:[#allocation2 + $0x3a0] ss:$20 sps:$4 sm:$0xff]   ;;  %v4399_v7 = vld [vmem:[#allocation2 + $0x150] ss:$20 sps:$4 sm:$0xff]  }
  0x6a   :  { %1048 = vmatprep.subr.bf16.mxu0 %v4347_v8  ;;  %1130 = vmatprep.subr.bf16.mxu1 %v4350_v9  ;;  %v4400_v9 = vld [vmem:[#allocation2 + $0x10] ss:$20 sps:$4 sm:$0xff]  }
  0x6d   :  { %1049 = vmatpush1.bf16.msra.mxu0 %v4345_v10  ;;  %1131 = vmatpush1.bf16.msra.mxu1 %v4348_v11  ;;  %v4401_v10 = vld [vmem:[#allocation2 + $0x290] ss:$20 sps:$4 sm:$0xff]   ;;  %v4402_v11 = vld [vmem:[#allocation2 + $0x178] ss:$20 sps:$4 sm:$0xff]  }
  0x6e   :  { %1059 = vmatprep.subr.bf16.mxu0 %v4353_v12  ;;  %1141 = vmatprep.subr.bf16.mxu1 %v4356_v13  ;;  %v4403_v12 = vld [vmem:[#allocation2 + $0x38] ss:$20 sps:$4 sm:$0xff]  }
  0x6f   :  { %v4404_v13 = vld [vmem:[#allocation2 + $0x2b8] ss:$20 sps:$4 sm:$0xff]  }
 0x103   :  { %v170_v21 = vpop.f32.mrb[0].mxu0  ;;  %v211_v26 = vpop.f32.mrb[0].mxu1 }
 0x104   :  { %v171_v22 = vadd.f32 %v170_v21, %v88_v19  ;;  %v172_v23 = vpop.f32.mrb[1].mxu0  ;;  %v4139_v29 = vpop.f32.mrb[1].mxu1  ;;  %v212_v61 = vadd.f32 %v211_v26, %v96_v56  ;;  %v4407_v19 = vld [vmem:[#allocation2 + $0x2e0] ss:$20 sps:$4 sm:$0xff]   ;;  %v4409_v21 = vld [vmem:[#allocation2 + $0x88] ss:$20 sps:$4 sm:$0xff]  }
 0x105   :  { %v173_v24 = vadd.f32 %v172_v23, %v92_v20  ;;  %v174_v25 = vpop.f32.mrb[2].mxu0  ;;  %v214_v31 = vpop.f32.mrb[2].mxu1  ;;  %v4408_v20 = vld [vmem:[#allocation2 + $0x1c8] ss:$20 sps:$4 sm:$0xff]   ;;  %v4411_v23 = vld [vmem:[#allocation2 + $0x1f0] ss:$20 sps:$4 sm:$0xff]  }
 0x106   :  { %v217_v27 = vmax.f32 %v171_v22, 0.0  ;;  %v175_v28 = vpop.f32.mrb[3].mxu0  ;;  %v4140_v32 = vpop.f32.mrb[3].mxu1  ;;  %v219_v4 = vmax.f32 %v212_v61, 0.0  ;;  %v4410_v22 = vld [vmem:[#allocation2 + $0x308] ss:$20 sps:$4 sm:$0xff]  }
 0x107   :  { %v218_v30 = vmax.f32 %v173_v24, 0.0  ;;  %v4412_v24 = vld [vmem:[#allocation2 + $0xb0] ss:$20 sps:$4 sm:$0xff]   ;;  %v4414_v26 = vld [vmem:[#allocation2 + $0x218] ss:$20 sps:$4 sm:$0xff]  }
 0x108   :  { %v4964_v36 = vpack.c.bf16 %v217_v27, %v217_v27  ;;  %v4977_v8 = vpack.c.bf16 %v219_v4, %v219_v4  ;;  %v4413_v25 = vld [vmem:[#allocation2 + $0x330] ss:$20 sps:$4 sm:$0xff]   ;;  %v4415_v27 = vld [vmem:[#allocation2 + $0xd8] ss:$20 sps:$4 sm:$0xff]   ;;  %v4417_v29 = vld [vmem:[#allocation2 + $0x240] ss:$20 sps:$4 sm:$0xff]  }
 0x109   :  { %v4962_v33 = vpack.c.bf16 %v218_v30, %v218_v30  ;;  %v4416_v28 = vld [vmem:[#allocation2 + $0x358] ss:$20 sps:$4 sm:$0xff]   ;;  %v4418_v30 = vld [vmem:[#allocation2 + $0x100] ss:$20 sps:$4 sm:$0xff]   ;;  %v4420_v32 = vld [vmem:[#allocation2 + $0x268] ss:$20 sps:$4 sm:$0xff]  }
 0x10a   :  { %v4419_v31 = vld [vmem:[#allocation2 + $0x380] ss:$20 sps:$4 sm:$0xff]   ;;  %v4445_v56 = vld [vmem:[#allocation5 + $0x58] ss:$20 sps:$4 sm:$0xff]  }
 0x10b   :  { %1050 = vmatprep.mubr.bf16.mxu0 %v4962_v33  ;;  %1132 = vmatprep.mubr.bf16.mxu1 %v4962_v33  ;;  %v4454_v61 = vld [vmem:[#allocation5 + $0xa0] ss:$20 sps:$4 sm:$0xff]  }
 0x10c   :  { %1051 = vmatmul.mubr.bf16.vlgmr.msra.gmra.mrb[4].mxu0 %v4964_v36  ;;  %1133 = vmatmul.mubr.bf16.vlgmr.msra.gmra.mrb[4].mxu1 %v4964_v36  ;;  %v4465_v4 = vld [vmem:[#allocation5 + $0xd4] ss:$20 sps:$4 sm:$0xff]  }
 0x10d   :  { %1060 = vmatpush1.bf16.msra.mxu0 %v4351_v34  ;;  %1142 = vmatpush1.bf16.msra.mxu1 %v4354_v35  ;;  %v4422_v34 = vld [vmem:[#allocation2 + $0x3a8] ss:$20 sps:$4 sm:$0xff]   ;;  %v4425_v35 = vld [vmem:[%s5254_s6 + $0x4] ss:$20 sps:$4 sm:$0xff]  }
 0x10e   :  { %1061 = vmatprep.subr.bf16.mxu0 %v4359_v37  ;;  %1143 = vmatprep.subr.bf16.mxu1 %v4362_v38  ;;  %v4428_v37 = vld [vmem:[%s5254_s6 + $0xc] ss:$20 sps:$4 sm:$0xff]  }
 0x10f   :  { %1091 = vmatprep.mubr.bf16.mxu0 %v4826_v0  ;;  %1173 = vmatprep.mubr.bf16.mxu1 %v4826_v0  ;;  %v4423_v38 = vld [vmem:[%s5254_s6] ss:$20 sps:$4 sm:$0xff]  }
 0x111   :  { %1062 = vmatpush1.bf16.msra.mxu0 %v4357_v39  ;;  %1144 = vmatpush1.bf16.msra.mxu1 %v4360_v40  ;;  %v4426_v39 = vld [vmem:[%s5254_s6 + $0x8] ss:$20 sps:$4 sm:$0xff]   ;;  %v4432_v40 = vld [vmem:[#allocation5 + $0x4] ss:$20 sps:$4 sm:$0xff]  }
 0x112   :  { %1063 = vmatprep.subr.bf16.mxu0 %v4365_v41  ;;  %1145 = vmatprep.subr.bf16.mxu1 %v4368_v42  ;;  %v73_v41 = vld [vmem:[%s5249_s1] sm:$0xff] }
 0x113   :  { %v74_v42 = vpack.c.bf16 %v73_v41, %v73_v41  ;;  %v4516_v41 = vld [vmem:[#allocation5 + $0x234] ss:$20 sps:$4 sm:$0xff]  }
 0x115   :  { %1064 = vmatpush1.bf16.msra.mxu0 %v4363_v43  ;;  %1146 = vmatpush1.bf16.msra.mxu1 %v4366_v44  ;;  %v4435_v43 = vld [vmem:[#allocation5 + $0xc] ss:$20 sps:$4 sm:$0xff]  }
 0x116   :  { %1065 = vmatprep.subr.bf16.mxu0 %v4371_v45  ;;  %1147 = vmatprep.subr.bf16.mxu1 %v4374_v46  ;;  %v4430_v44 = vld [vmem:[#allocation5] ss:$20 sps:$4 sm:$0xff]   ;;  %v4436_v46 = vld [vmem:[#allocation5 + $0x28] ss:$20 sps:$4 sm:$0xff]  }
 0x117   :  { %v4438_v45 = vld [vmem:[#allocation5 + $0x2c] ss:$20 sps:$4 sm:$0xff]  }
 0x119   :  { %1066 = vmatpush1.bf16.msra.mxu0 %v4369_v47  ;;  %1148 = vmatpush1.bf16.msra.mxu1 %v4372_v48  ;;  %v4444_v47 = vld [vmem:[#allocation5 + $0x54] ss:$20 sps:$4 sm:$0xff]  }
 0x11a   :  { %1067 = vmatprep.subr.bf16.mxu0 %v4377_v49  ;;  %1149 = vmatprep.subr.bf16.mxu1 %v4380_v50  ;;  %v4433_v48 = vld [vmem:[#allocation5 + $0x8] ss:$20 sps:$4 sm:$0xff]   ;;  %v4442_v50 = vld [vmem:[#allocation5 + $0x50] ss:$20 sps:$4 sm:$0xff]  }
 0x11b   :  { %v4441_v49 = vld [vmem:[#allocation5 + $0x34] ss:$20 sps:$4 sm:$0xff]  }
 0x11d   :  { %1068 = vmatpush1.bf16.msra.mxu0 %v4375_v52  ;;  %1150 = vmatpush1.bf16.msra.mxu1 %v4378_v53  ;;  %v4450_v52 = vld [vmem:[#allocation5 + $0x7c] ss:$20 sps:$4 sm:$0xff]  }
 0x11e   :  { %1069 = vmatprep.subr.bf16.mxu0 %v4383_v54  ;;  %1151 = vmatprep.subr.bf16.mxu1 %v4386_v55  ;;  %v4439_v53 = vld [vmem:[#allocation5 + $0x30] ss:$20 sps:$4 sm:$0xff]   ;;  %v4448_v55 = vld [vmem:[#allocation5 + $0x78] ss:$20 sps:$4 sm:$0xff]  }
 0x11f   :  { %v4447_v54 = vld [vmem:[#allocation5 + $0x5c] ss:$20 sps:$4 sm:$0xff]  }
 0x121   :  { %1070 = vmatpush1.bf16.msra.mxu0 %v4381_v57  ;;  %1152 = vmatpush1.bf16.msra.mxu1 %v4384_v58  ;;  %v4453_v57 = vld [vmem:[#allocation5 + $0x84] ss:$20 sps:$4 sm:$0xff]   ;;  %v4451_v58 = vld [vmem:[#allocation5 + $0x80] ss:$20 sps:$4 sm:$0xff]  }
 0x122   :  { %1071 = vmatprep.subr.bf16.mxu0 %v4389_v59  ;;  %1153 = vmatprep.subr.bf16.mxu1 %v4392_v60  ;;  %v4456_v59 = vld [vmem:[#allocation5 + $0xa4] ss:$20 sps:$4 sm:$0xff]   ;;  %v4459_v60 = vld [vmem:[#allocation5 + $0xac] ss:$20 sps:$4 sm:$0xff]  }
 0x125   :  { %1072 = vmatpush1.bf16.msra.mxu0 %v4387_v62  ;;  %1154 = vmatpush1.bf16.msra.mxu1 %v4390_v63  ;;  %v4457_v62 = vld [vmem:[#allocation5 + $0xa8] ss:$20 sps:$4 sm:$0xff]  }
 0x126   :  { %1073 = vmatprep.subr.bf16.mxu0 %v4395_v2  ;;  %1155 = vmatprep.subr.bf16.mxu1 %v4398_v3  ;;  %v4460_v63 = vld [vmem:[#allocation5 + $0xc8] ss:$20 sps:$4 sm:$0xff]   ;;  %v4462_v2 = vld [vmem:[#allocation5 + $0xcc] ss:$20 sps:$4 sm:$0xff]   ;;  %v4463_v3 = vld [vmem:[#allocation5 + $0xd0] ss:$20 sps:$4 sm:$0xff]  }
 0x129   :  { %1074 = vmatpush1.bf16.msra.mxu0 %v4393_v5  ;;  %1156 = vmatpush1.bf16.msra.mxu1 %v4396_v6  ;;  %v4468_v5 = vld [vmem:[#allocation5 + $0xf4] ss:$20 sps:$4 sm:$0xff]   ;;  %v4471_v6 = vld [vmem:[#allocation5 + $0xfc] ss:$20 sps:$4 sm:$0xff]  }
 0x12a   :  { %3994 = vmatprep.subr.bf16.mxu0 %v4399_v7  ;;  %4141 = vmatprep.subr.bf16.mxu1 %v4827_v1  ;;  %v4466_v7 = vld [vmem:[#allocation5 + $0xf0] ss:$20 sps:$4 sm:$0xff]  }
 0x12c   :  { %1092 = vmatmul.mubr.bf16.vlgmr.msra.gmra.mrb[4].mxu0 %v4977_v8  ;;  %1174 = vmatmul.mubr.bf16.vlgmr.msra.gmra.mrb[4].mxu1 %v4977_v8 }
 0x12d   :  { %3995 = vmatpush3.bf16.msra.mxu0 %v4400_v9  ;;  %1214 = vmatprep.mubr.bf16.mxu0 %v4962_v33  ;;  %v4421_v33 = vld [vmem:[#allocation2 + $0x128] ss:$20 sps:$4 sm:$0xff]  }
 0x12e   :  { %4142 = vmatpush3.bf16.msra.mxu1 %v4401_v10  ;;  %3996 = vmatprep.subr.bf16.mxu0 %v4402_v11  ;;  %v4474_v9 = vld [vmem:[#allocation5 + $0x11c] ss:$20 sps:$4 sm:$0xff]   ;;  %v4477_v10 = vld [vmem:[#allocation5 + $0x124] ss:$20 sps:$4 sm:$0xff]  }
 0x12f   :  { %4143 = vmatprep.subr.bf16.mxu1 %v4827_v1  ;;  %4157 = vmatprep.mubr.msk.bf16.mxu1 %vm4828_vm0, %v4827_v1  ;;  %v4472_v11 = vld [vmem:[#allocation5 + $0x118] ss:$20 sps:$4 sm:$0xff]  }
 0x131   :  { %3997 = vmatpush3.bf16.msra.mxu0 %v4403_v12  ;;  %v4475_v12 = vld [vmem:[#allocation5 + $0x120] ss:$20 sps:$4 sm:$0xff]  }
 0x132   :  { %4144 = vmatpush3.bf16.msra.mxu1 %v4404_v13  ;;  %3998 = vmatprep.subr.bf16.mxu0 %v4405_v14  ;;  %v4480_v13 = vld [vmem:[#allocation5 + $0x144] ss:$20 sps:$4 sm:$0xff]   ;;  %v4483_v14 = vld [vmem:[#allocation5 + $0x14c] ss:$20 sps:$4 sm:$0xff]  }
 0x133   :  { %4145 = vmatprep.subr.bf16.mxu1 %v4827_v1 }
 0x135   :  { %3999 = vmatpush3.bf16.msra.mxu0 %v4406_v17  ;;  %v4478_v17 = vld [vmem:[#allocation5 + $0x140] ss:$20 sps:$4 sm:$0xff]  }
 0x136   :  { %4146 = vmatpush3.bf16.msra.mxu1 %v4407_v19  ;;  %4000 = vmatprep.subr.bf16.mxu0 %v4408_v20  ;;  %v4481_v19 = vld [vmem:[#allocation5 + $0x148] ss:$20 sps:$4 sm:$0xff]   ;;  %v4486_v20 = vld [vmem:[#allocation5 + $0x16c] ss:$20 sps:$4 sm:$0xff]  }
 0x137   :  { %4147 = vmatprep.subr.bf16.mxu1 %v4827_v1 }
 0x139   :  { %4001 = vmatpush3.bf16.msra.mxu0 %v4409_v21  ;;  %v4489_v21 = vld [vmem:[#allocation5 + $0x174] ss:$20 sps:$4 sm:$0xff]  }
 0x13a   :  { %4148 = vmatpush3.bf16.msra.mxu1 %v4410_v22  ;;  %4002 = vmatprep.subr.bf16.mxu0 %v4411_v23  ;;  %v4484_v22 = vld [vmem:[#allocation5 + $0x168] ss:$20 sps:$4 sm:$0xff]   ;;  %v4487_v23 = vld [vmem:[#allocation5 + $0x170] ss:$20 sps:$4 sm:$0xff]  }
 0x13b   :  { %4149 = vmatprep.subr.bf16.mxu1 %v4827_v1 }
 0x13d   :  { %4003 = vmatpush3.bf16.msra.mxu0 %v4412_v24  ;;  %v4492_v24 = vld [vmem:[#allocation5 + $0x194] ss:$20 sps:$4 sm:$0xff]  }
 0x13e   :  { %4150 = vmatpush3.bf16.msra.mxu1 %v4413_v25  ;;  %4004 = vmatprep.subr.bf16.mxu0 %v4414_v26  ;;  %v4495_v25 = vld [vmem:[#allocation5 + $0x19c] ss:$20 sps:$4 sm:$0xff]  }
 0x13f   :  { %4151 = vmatprep.subr.bf16.mxu1 %v4827_v1  ;;  %v4490_v26 = vld [vmem:[#allocation5 + $0x190] ss:$20 sps:$4 sm:$0xff]  }
 0x141   :  { %4005 = vmatpush3.bf16.msra.mxu0 %v4415_v27  ;;  %v4493_v27 = vld [vmem:[#allocation5 + $0x198] ss:$20 sps:$4 sm:$0xff]  }
 0x142   :  { %4152 = vmatpush3.bf16.msra.mxu1 %v4416_v28  ;;  %4006 = vmatprep.subr.bf16.mxu0 %v4417_v29  ;;  %v4498_v28 = vld [vmem:[#allocation5 + $0x1bc] ss:$20 sps:$4 sm:$0xff]   ;;  %v4501_v29 = vld [vmem:[#allocation5 + $0x1c4] ss:$20 sps:$4 sm:$0xff]  }
 0x143   :  { %4153 = vmatprep.subr.bf16.mxu1 %v4827_v1 }
 0x145   :  { %4007 = vmatpush3.bf16.msra.mxu0 %v4418_v30  ;;  %v4496_v30 = vld [vmem:[#allocation5 + $0x1b8] ss:$20 sps:$4 sm:$0xff]  }
 0x146   :  { %4154 = vmatpush3.bf16.msra.mxu1 %v4419_v31  ;;  %4008 = vmatprep.subr.bf16.mxu0 %v4420_v32  ;;  %v4499_v31 = vld [vmem:[#allocation5 + $0x1c0] ss:$20 sps:$4 sm:$0xff]   ;;  %v4504_v32 = vld [vmem:[#allocation5 + $0x1e4] ss:$20 sps:$4 sm:$0xff]  }
 0x147   :  { %4155 = vmatprep.subr.bf16.mxu1 %v4827_v1 }
 0x149   :  { %4009 = vmatpush3.bf16.msra.mxu0 %v4421_v33  ;;  %v4507_v33 = vld [vmem:[#allocation5 + $0x1ec] ss:$20 sps:$4 sm:$0xff]  }
 0x14a   :  { %4156 = vmatpush3.bf16.msra.mxu1 %v4422_v34  ;;  %1330 = vmatprep.subr.bf16.mxu0 %v4425_v35  ;;  %v4502_v34 = vld [vmem:[#allocation5 + $0x1e0] ss:$20 sps:$4 sm:$0xff]   ;;  %v4505_v35 = vld [vmem:[#allocation5 + $0x1e8] ss:$20 sps:$4 sm:$0xff]  }
 0x14b   :  { %1371 = vmatprep.subr.bf16.mxu1 %v4428_v37  ;;  %v4510_v37 = vld [vmem:[#allocation5 + $0x20c] ss:$20 sps:$4 sm:$0xff]  }
 0x14c   :  { %1215 = vmatmul.mubr.bf16.vlgmr.msra.gmra.mrb[8].mxu0 %v4964_v36  ;;  %v4429_v36 = vld [vmem:[%s5254_s6 + $0x10] ss:$20 sps:$4 sm:$0xff]  }
 0x14d   :  { %4158 = vmatmul.mubr.bf16.vlgmr.msra.gmra.mrb[8].mxu1 %v4977_v8  ;;  %1331 = vmatpush1.bf16.msra.mxu0 %v4423_v38  ;;  %v4469_v8 = vld [vmem:[#allocation5 + $0xf8] ss:$20 sps:$4 sm:$0xff]   ;;  %v4513_v38 = vld [vmem:[#allocation5 + $0x214] ss:$20 sps:$4 sm:$0xff]  }
 0x14e   :  { %1372 = vmatpush1.bf16.msra.mxu1 %v4426_v39  ;;  %1362 = vmatprep.mubr.bf16.mxu0 %v4826_v0  ;;  %v4508_v39 = vld [vmem:[#allocation5 + $0x208] ss:$20 sps:$4 sm:$0xff]  }
 0x14f   :  { %1403 = vmatprep.mubr.bf16.mxu1 %v4826_v0  ;;  %4161 = vmatprep.subr.bf16.mxu0 %v4827_v1 }
 0x150   :  { %2774 = vmatprep.subr.bf16.mxu1 %v4432_v40  ;;  %v4511_v40 = vld [vmem:[#allocation5 + $0x210] ss:$20 sps:$4 sm:$0xff]  }
 0x154   :  { %3747 = vmatmul.mubr.msk.bf16.vlgmr.msra.gmra.mrb[12].mxu0 %vm1326_vm2, %v74_v42 }
 0x155   :  { %3748 = vmatmul.mubr.msk.bf16.vlgmr.msra.gmra.mrb[12].mxu1 %vm1326_vm2, %v74_v42  ;;  %4162 = vmatpush3.bf16.msra.mxu0 %v4429_v36  ;;  %v4514_v36 = vld [vmem:[#allocation5 + $0x230] ss:$20 sps:$4 sm:$0xff]  }
 0x156   :  { %4163 = vmatprep.mubr.msk.bf16.mxu0 %vm4828_vm0, %v4827_v1  ;;  %2897 = vmatprep.subr.bf16.mxu0 %v4435_v43  ;;  %v4517_v43 = vld [vmem:[#allocation5 + $0x238] ss:$20 sps:$4 sm:$0xff]  }
 0x157   :  { %2775 = vmatpush1.bf16.msra.mxu1 %v4430_v44  ;;  %v4522_v44 = vld [vmem:[#allocation5 + $0x25c] ss:$20 sps:$4 sm:$0xff]  }
 0x158   :  { %2776 = vmatprep.subr.bf16.mxu1 %v4438_v45  ;;  %v4525_v45 = vld [vmem:[#allocation5 + $0x264] ss:$20 sps:$4 sm:$0xff]  }
 0x15b   :  { %2777 = vmatpush1.bf16.msra.mxu1 %v4436_v46  ;;  %v4520_v46 = vld [vmem:[#allocation5 + $0x258] ss:$20 sps:$4 sm:$0xff]  }
 0x15c   :  { %4164 = vmatmul.mubr.msk.bf16.vlgmr.msra.gmra.mrb[16].mxu0 %vm1326_vm2, %v74_v42  ;;  %2778 = vmatprep.subr.bf16.mxu1 %v4444_v47  ;;  %v4519_v42 = vld [vmem:[#allocation5 + $0x23c] ss:$20 sps:$4 sm:$0xff]   ;;  %v4523_v47 = vld [vmem:[#allocation5 + $0x260] ss:$20 sps:$4 sm:$0xff]  }
 0x15d   :  { %2898 = vmatpush1.bf16.msra.mxu0 %v4433_v48  ;;  %v4528_v48 = vld [vmem:[#allocation5 + $0x284] ss:$20 sps:$4 sm:$0xff]  }
 0x15e   :  { %2899 = vmatprep.subr.bf16.mxu0 %v4441_v49  ;;  %v4531_v49 = vld [vmem:[#allocation5 + $0x28c] ss:$20 sps:$4 sm:$0xff]  }
 0x15f   :  { %2779 = vmatpush1.bf16.msra.mxu1 %v4442_v50 }
 0x160   :  { %2780 = vmatprep.subr.bf16.mxu1 %v4450_v52 }
 0x161   :  { %2900 = vmatpush1.bf16.msra.mxu0 %v4439_v53 }
 0x162   :  { %2901 = vmatprep.subr.bf16.mxu0 %v4447_v54 }
 0x163   :  { %2781 = vmatpush1.bf16.msra.mxu1 %v4448_v55 }
 0x164   :  { %2782 = vmatprep.subr.bf16.mxu1 %v4456_v59  ;;  %v5021_v59 = vsub.s32 4, %v4945_v15 }
 0x165   :  { %2902 = vmatpush1.bf16.msra.mxu0 %v4445_v56 }
 0x166   :  { %2903 = vmatprep.subr.bf16.mxu0 %v4453_v57 }
 0x167   :  { %2783 = vmatpush1.bf16.msra.mxu1 %v4454_v61 }
 0x168   :  { %2784 = vmatprep.subr.bf16.mxu1 %v4462_v2 }
 0x169   :  { %2904 = vmatpush1.bf16.msra.mxu0 %v4451_v58 }
 0x16a   :  { %2905 = vmatprep.subr.bf16.mxu0 %v4459_v60  ;;  %v367_v60 = vld [vmem:[%s5253_s5] sm:$0x1f] }
 0x16b   :  { %2785 = vmatpush1.bf16.msra.mxu1 %v4460_v63  ;;  %v5028_v63 = vsub.s32 3, %v4945_v15 }
 0x16c   :  { %2786 = vmatprep.subr.bf16.mxu1 %v4468_v5 }
 0x16d   :  { %2906 = vmatpush1.bf16.msra.mxu0 %v4457_v62  ;;  %v388_v62 = vrot.slane %v367_v60, %v5021_v59 }
 0x16e   :  { %2907 = vmatprep.subr.bf16.mxu0 %v4465_v4 }
 0x16f   :  { %2787 = vmatpush1.bf16.msra.mxu1 %v4466_v7  ;;  %v1273_v7 = vld [vmem:[%s5255_s7] sm:$0x1f]  ;;  %s4829_s7 = smov [#allocation7]  }
 0x170   :  { %2788 = vmatprep.subr.bf16.mxu1 %v4474_v9  ;;  %s3604_s16 = sshll.u32 %s4829_s7, 4  ;;  %s3605_s16 = int_to_ptr.vmem [resolvable:$true] %s3604_s16 }
 0x171   :  { %2908 = vmatpush1.bf16.msra.mxu0 %v4463_v3  ;;  %p4799_p3 = scmp.lt.s32.totalorder %s3605_s16, %s3605_s16 }
 0x172   :  { %2909 = vmatprep.subr.bf16.mxu0 %v4471_v6 }
 0x173   :  { %2789 = vmatpush1.bf16.msra.mxu1 %v4472_v11  ;;  %v380_v11 = vrot.slane %v367_v60, %v4973_v51 }
 0x174   :  { %2790 = vmatprep.subr.bf16.mxu1 %v4480_v13 }
 0x175   :  { %2910 = vmatpush1.bf16.msra.mxu0 %v4469_v8  ;;  %v372_v8 = vrot.slane %v367_v60, %v4948_v16 }
 0x176   :  { %2911 = vmatprep.subr.bf16.mxu0 %v4477_v10 }
 0x177   :  { %2791 = vmatpush1.bf16.msra.mxu1 %v4478_v17  ;;  %v1278_v17 = vrot.slane %v1273_v7, %v4948_v16 }
 0x178   :  { %2792 = vmatprep.subr.bf16.mxu1 %v4486_v20  ;;  %v1286_v20 = vrot.slane %v1273_v7, %v4973_v51 }
 0x179   :  { %2912 = vmatpush1.bf16.msra.mxu0 %v4475_v12  ;;  %v376_v12 = vrot.slane %v367_v60, %v4956_v18 }
 0x17a   :  { %2913 = vmatprep.subr.bf16.mxu0 %v4483_v14  ;;  %v384_v14 = vrot.slane %v367_v60, %v5028_v63 }
 0x17b   :  { %2793 = vmatpush1.bf16.msra.mxu1 %v4484_v22 }
 0x17c   :  { %2794 = vmatprep.subr.bf16.mxu1 %v4492_v24 }
 0x17d   :  { %2914 = vmatpush1.bf16.msra.mxu0 %v4481_v19 }
 0x17e   :  { %2915 = vmatprep.subr.bf16.mxu0 %v4489_v21  ;;  %v1282_v21 = vrot.slane %v1273_v7, %v4956_v18 }
 0x17f   :  { %2795 = vmatpush1.bf16.msra.mxu1 %v4490_v26 }
 0x180   :  { %2796 = vmatprep.subr.bf16.mxu1 %v4498_v28 }
 0x181   :  { %2916 = vmatpush1.bf16.msra.mxu0 %v4487_v23  ;;  %v1290_v23 = vrot.slane %v1273_v7, %v5028_v63 }
 0x182   :  { %2917 = vmatprep.subr.bf16.mxu0 %v4495_v25 }
 0x183   :  { %2797 = vmatpush1.bf16.msra.mxu1 %v4496_v30 }
 0x184   :  { %2798 = vmatprep.subr.bf16.mxu1 %v4504_v32 }
 0x185   :  { %2918 = vmatpush1.bf16.msra.mxu0 %v4493_v27 }
 0x186   :  { %2919 = vmatprep.subr.bf16.mxu0 %v4501_v29 }
 0x187   :  { %2799 = vmatpush1.bf16.msra.mxu1 %v4502_v34 }
 0x188   :  { %2800 = vmatprep.subr.bf16.mxu1 %v4510_v37 }
 0x189   :  { %2920 = vmatpush1.bf16.msra.mxu0 %v4499_v31 }
 0x18a   :  { %2921 = vmatprep.subr.bf16.mxu0 %v4507_v33 }
 0x18b   :  { %2801 = vmatpush1.bf16.msra.mxu1 %v4508_v39 }
 0x18c   :  { %2802 = vmatprep.subr.bf16.mxu1 %v4516_v41 }
 0x18d   :  { %2922 = vmatpush1.bf16.msra.mxu0 %v4505_v35 }
 0x18e   :  { %2923 = vmatprep.subr.bf16.mxu0 %v4513_v38 }
 0x18f   :  { %2803 = vmatpush1.bf16.msra.mxu1 %v4514_v36 }
 0x190   :  { %2804 = vmatprep.subr.bf16.mxu1 %v4522_v44 }
 0x191   :  { %2924 = vmatpush1.bf16.msra.mxu0 %v4511_v40 }
 0x192   :  { %2925 = vmatprep.subr.bf16.mxu0 %v4519_v42 }
 0x193   :  { %2805 = vmatpush1.bf16.msra.mxu1 %v4520_v46 }
 0x194   :  { %2815 = vmatprep.subr.bf16.mxu1 %v4528_v48  ;;  %v1294_v48 = vrot.slane %v1273_v7, %v5021_v59  ;;  %v4532_v7 = vld [vmem:[#allocation5 + $0x2a8] ss:$20 sps:$4 sm:$0xff]  }
 0x195   :  { %2926 = vmatpush1.bf16.msra.mxu0 %v4517_v43 }
 0x196   :  { %2927 = vmatprep.subr.bf16.mxu0 %v4525_v45 }
 0x199   :  { %2928 = vmatpush1.bf16.msra.mxu0 %v4523_v47 }
 0x19a   :  { %2938 = vmatprep.subr.bf16.mxu0 %v4531_v49 }
 0x1ff   :  { %v1093_v50 = vpop.f32.mrb[4].mxu0  ;;  %v1175_v52 = vpop.f32.mrb[4].mxu1 }
 0x200   :  { %v1095_v53 = vpop.f32.mrb[5].mxu0  ;;  %v1177_v54 = vpop.f32.mrb[5].mxu1  ;;  %v4207_v22 = vadd.f32 %v1093_v50, %v372_v8  ;;  %v4209_v24 = vadd.f32 %v1175_v52, %v380_v11  ;;  %v4535_v8 = vld [vmem:[#allocation5 + $0x2b0] ss:$20 sps:$4 sm:$0xff]  }
 0x201   :  { %v1097_v55 = vpop.f32.mrb[6].mxu0  ;;  %v1179_v56 = vpop.f32.mrb[6].mxu1  ;;  %v4208_v25 = vadd.f32 %v1095_v53, %v376_v12  ;;  %v4210_v27 = vadd.f32 %v1177_v54, %v384_v14  ;;  %v4543_v11 = vld [vmem:[#allocation5 + $0x2dc] ss:$20 sps:$4 sm:$0xff]   ;;  %v4549_v14 = vld [vmem:[#allocation5 + $0x304] ss:$20 sps:$4 sm:$0xff]  }
 0x202   :  { %v1098_v57 = vpop.f32.mrb[7].mxu0  ;;  %v1180_v58 = vpop.f32.mrb[7].mxu1  ;;  %v1262_v35 = vmax.f32 %v4207_v22, 0.0  ;;  %v1264_v41 = vmax.f32 %v4209_v24, 0.0  ;;  %v4526_v55 = vld [vmem:[#allocation5 + $0x280] ss:$20 sps:$4 sm:$0xff]  }
 0x203   :  { %v1263_v42 = vmax.f32 %v4208_v25, 0.0  ;;  %v1265_v45 = vmax.f32 %v4210_v27, 0.0  ;;  %v4529_v56 = vld [vmem:[#allocation5 + $0x288] ss:$20 sps:$4 sm:$0xff]   ;;  %v4538_v12 = vld [vmem:[#allocation5 + $0x2d0] ss:$20 sps:$4 sm:$0xff]  }
 0x204   :  { %v4550_v22 = vld [vmem:[#allocation5 + $0x320] ss:$20 sps:$4 sm:$0xff]   ;;  %v4559_v27 = vld [vmem:[#allocation5 + $0x350] ss:$20 sps:$4 sm:$0xff]  }
 0x205   :  { %v4558_v24 = vld [vmem:[#allocation5 + $0x34c] ss:$20 sps:$4 sm:$0xff]   ;;  %v4561_v25 = vld [vmem:[#allocation5 + $0x354] ss:$20 sps:$4 sm:$0xff]  }
 0x21f   :  { %v4010_v61 = vpop.f32.mrb[8].mxu0 }
 0x220   :  { %v1256_v2 = vpop.f32.mrb[8].mxu1  ;;  %v4011_v3 = vpop.f32.mrb[9].mxu0 }
 0x221   :  { %v4012_v4 = vadd.f32 %v4011_v3, %v4010_v61  ;;  %v4159_v5 = vpop.f32.mrb[9].mxu1  ;;  %v4013_v6 = vpop.f32.mrb[10].mxu0  ;;  %v4534_v61 = vld [vmem:[#allocation5 + $0x2ac] ss:$20 sps:$4 sm:$0xff]  }
 0x222   :  { %v1259_v9 = vpop.f32.mrb[10].mxu1  ;;  %v4014_v10 = vpop.f32.mrb[11].mxu0 }
 0x223   :  { %v1217_v13 = vadd.f32 %v4012_v4, %v388_v62  ;;  %v4160_v15 = vpop.f32.mrb[11].mxu1  ;;  %v4537_v62 = vld [vmem:[#allocation5 + $0x2b4] ss:$20 sps:$4 sm:$0xff]  }
 0x224   :  { %v4540_v10 = vld [vmem:[#allocation5 + $0x2d4] ss:$20 sps:$4 sm:$0xff]   ;;  %v4546_v15 = vld [vmem:[#allocation5 + $0x2fc] ss:$20 sps:$4 sm:$0xff]  }
 0x225   :  { %v1257_v19 = vadd.f32 %v1256_v2, %v1217_v13  ;;  %v4541_v13 = vld [vmem:[#allocation5 + $0x2d8] ss:$20 sps:$4 sm:$0xff]  }
 0x227   :  { %v1364_v26 = vpop.f32.mrb[12].mxu0  ;;  %v1266_v4 = vmax.f32 %v1257_v19, 0.0  ;;  %v4547_v19 = vld [vmem:[#allocation5 + $0x300] ss:$20 sps:$4 sm:$0xff]  }
 0x228   :  { %v1365_v28 = vadd.f32 %v1364_v26, %v1278_v17  ;;  %v1405_v29 = vpop.f32.mrb[12].mxu1  ;;  %v1366_v30 = vpop.f32.mrb[13].mxu0  ;;  %v4544_v17 = vld [vmem:[#allocation5 + $0x2f8] ss:$20 sps:$4 sm:$0xff]   ;;  %v4556_v26 = vld [vmem:[#allocation5 + $0x348] ss:$20 sps:$4 sm:$0xff]  }
 0x229   :  { %v1406_v31 = vadd.f32 %v1405_v29, %v1286_v20  ;;  %v1367_v32 = vadd.f32 %v1366_v30, %v1282_v21  ;;  %v1407_v33 = vpop.f32.mrb[13].mxu1  ;;  %v1368_v34 = vpop.f32.mrb[14].mxu0  ;;  %v4552_v20 = vld [vmem:[#allocation5 + $0x324] ss:$20 sps:$4 sm:$0xff]   ;;  %v4555_v21 = vld [vmem:[#allocation5 + $0x32c] ss:$20 sps:$4 sm:$0xff]  }
 0x22a   :  { %v1452_v37 = vmax.f32 %v1365_v28, 0.0  ;;  %v1408_v38 = vadd.f32 %v1407_v33, %v1290_v23  ;;  %v1369_v39 = vpop.f32.mrb[15].mxu0  ;;  %v1409_v40 = vpop.f32.mrb[14].mxu1  ;;  %v4553_v23 = vld [vmem:[#allocation5 + $0x328] ss:$20 sps:$4 sm:$0xff]  }
 0x22b   :  { %v1454_v36 = vmax.f32 %v1406_v31, 0.0  ;;  %v1453_v43 = vmax.f32 %v1367_v32, 0.0  ;;  %v1410_v44 = vpop.f32.mrb[15].mxu1  ;;  %v4564_v28 = vld [vmem:[#allocation5 + $0x374] ss:$20 sps:$4 sm:$0xff]  }
 0x22c   :  { %v1457_v46 = vadd.f32 %v1452_v37, %v1262_v35  ;;  %v1455_v47 = vmax.f32 %v1408_v38, 0.0  ;;  %v4567_v29 = vld [vmem:[#allocation5 + $0x37c] ss:$20 sps:$4 sm:$0xff]   ;;  %v4565_v31 = vld [vmem:[#allocation5 + $0x378] ss:$20 sps:$4 sm:$0xff]  }
 0x22d   :  { %v5042_v49 = vadd.f32 %v1454_v36, %v1264_v41  ;;  %v1458_v50 = vadd.f32 %v1453_v43, %v1263_v42  ;;  %v4562_v30 = vld [vmem:[#allocation5 + $0x370] ss:$20 sps:$4 sm:$0xff]   ;;  %v4568_v34 = vld [vmem:[#allocation5 + $0x398] ss:$20 sps:$4 sm:$0xff]   ;;  %v4571_v35 = vld [vmem:[#allocation5 + $0x3a0] ss:$20 sps:$4 sm:$0xff]  }
 0x22e   :  { %v1460_v52 = vadd.f32 %v1455_v47, %v1265_v45  ;;  %v5046_v57 = vpack.c.bf16 %v1457_v46, %v1457_v46  ;;  %v4570_v32 = vld [vmem:[#allocation5 + $0x39c] ss:$20 sps:$4 sm:$0xff]   ;;  %v4573_v33 = vld [vmem:[#allocation5 + $0x3a4] ss:$20 sps:$4 sm:$0xff]   ;;  %v4579_v38 = vld [vmem:[#allocation5 + $0x3cc] ss:$20 sps:$4 sm:$0xff]  }
 0x22f   :  { %v5044_v53 = vpack.c.bf16 %v1458_v50, %v1458_v50  ;;  %v1446_v54 = vpop.f32.mrb[16].mxu0  ;;  %v4576_v37 = vld [vmem:[#allocation5 + $0x3c4] ss:$20 sps:$4 sm:$0xff]   ;;  %v4574_v39 = vld [vmem:[#allocation5 + $0x3c0] ss:$20 sps:$4 sm:$0xff]  }
 0x230   :  { %v1447_v58 = vadd.f32 %v1446_v54, %v1294_v48  ;;  %v4165_v60 = vpop.f32.mrb[17].mxu0  ;;  %v5050_v3 = vpack.c.bf16 %v1460_v52, %v1460_v52  ;;  %v4577_v40 = vld [vmem:[#allocation5 + $0x3c8] ss:$20 sps:$4 sm:$0xff]   ;;  %v4582_v41 = vld [vmem:[#allocation5 + $0x3ec] ss:$20 sps:$4 sm:$0xff]  }
 0x231   :  { %2806 = vmatprep.mubr.bf16.mxu1 %v5044_v53  ;;  %2929 = vmatprep.mubr.bf16.mxu0 %v5044_v53  ;;  %v1449_v2 = vpop.f32.mrb[18].mxu0  ;;  %v4585_v42 = vld [vmem:[#allocation5 + $0x3f4] ss:$20 sps:$4 sm:$0xff]   ;;  %v4583_v43 = vld [vmem:[#allocation5 + $0x3f0] ss:$20 sps:$4 sm:$0xff]  }
 0x232   :  { %v1456_v5 = vmax.f32 %v1447_v58, 0.0  ;;  %2807 = vmatmul.mubr.bf16.vlgmr.msra.gmra.mrb[16].mxu1 %v5046_v57  ;;  %2930 = vmatmul.mubr.bf16.vlgmr.msra.gmra.mrb[20].mxu0 %v5046_v57  ;;  %v4166_v6 = vpop.f32.mrb[19].mxu0  ;;  %v4580_v36 = vld [vmem:[#allocation5 + $0x3e8] ss:$20 sps:$4 sm:$0xff]   ;;  %v4586_v46 = vld [vmem:[#allocation5 + $0x410] ss:$20 sps:$4 sm:$0xff]  }
 0x233   :  { %2816 = vmatpush1.bf16.msra.mxu1 %v4526_v55  ;;  %2939 = vmatpush1.bf16.msra.mxu0 %v4529_v56  ;;  %v4588_v44 = vld [vmem:[#allocation5 + $0x414] ss:$20 sps:$4 sm:$0xff]   ;;  %v4591_v45 = vld [vmem:[#allocation5 + $0x41c] ss:$20 sps:$4 sm:$0xff]   ;;  %v4589_v47 = vld [vmem:[#allocation5 + $0x418] ss:$20 sps:$4 sm:$0xff]  }
 0x234   :  { %v5054_v9 = vadd.f32 %v1456_v5, %v1266_v4  ;;  %2847 = vmatprep.mubr.bf16.mxu1 %v5050_v3  ;;  %2970 = vmatprep.mubr.bf16.mxu0 %v5050_v3  ;;  %v4594_v48 = vld [vmem:[#allocation5 + $0x43c] ss:$20 sps:$4 sm:$0xff]   ;;  %v4597_v50 = vld [vmem:[#allocation5 + $0x444] ss:$20 sps:$4 sm:$0xff]   ;;  %v4595_v54 = vld [vmem:[#allocation5 + $0x440] ss:$20 sps:$4 sm:$0xff]  }
 0x235   :  { %2817 = vmatprep.subr.bf16.mxu1 %v4534_v61  ;;  %2940 = vmatprep.subr.bf16.mxu0 %v4537_v62  ;;  %v4592_v52 = vld [vmem:[#allocation5 + $0x438] ss:$20 sps:$4 sm:$0xff]   ;;  %v4598_v58 = vld [vmem:[#allocation5 + $0x460] ss:$20 sps:$4 sm:$0xff]   ;;  %v4601_v60 = vld [vmem:[#allocation5 + $0x468] ss:$20 sps:$4 sm:$0xff]  }
 0x236   :  { %v4600_v55 = vld [vmem:[#allocation5 + $0x464] ss:$20 sps:$4 sm:$0xff]   ;;  %v4603_v56 = vld [vmem:[#allocation5 + $0x46c] ss:$20 sps:$4 sm:$0xff]   ;;  %v4609_v62 = vld [vmem:[#allocation5 + $0x494] ss:$20 sps:$4 sm:$0xff]  }
 0x237   :  { %2818 = vmatpush1.bf16.msra.mxu1 %v4532_v7  ;;  %2941 = vmatpush1.bf16.msra.mxu0 %v4535_v8  ;;  %v4606_v61 = vld [vmem:[#allocation5 + $0x48c] ss:$20 sps:$4 sm:$0xff]   ;;  %v4604_v2 = vld [vmem:[#allocation5 + $0x488] ss:$20 sps:$4 sm:$0xff]   ;;  %v4607_v4 = vld [vmem:[#allocation5 + $0x490] ss:$20 sps:$4 sm:$0xff]  }
 0x238   :  { %2819 = vmatprep.subr.bf16.mxu1 %v4540_v10  ;;  %2942 = vmatprep.subr.bf16.mxu0 %v4543_v11  ;;  %v4612_v5 = vld [vmem:[#allocation5 + $0x4b4] ss:$20 sps:$4 sm:$0xff]   ;;  %v4615_v6 = vld [vmem:[#allocation5 + $0x4bc] ss:$20 sps:$4 sm:$0xff]   ;;  %v4613_v8 = vld [vmem:[#allocation5 + $0x4b8] ss:$20 sps:$4 sm:$0xff]  }
 0x239   :  { %v4610_v7 = vld [vmem:[#allocation5 + $0x4b0] ss:$20 sps:$4 sm:$0xff]  }
 0x23a   :  { %v4618_v10 = vld [vmem:[#allocation5 + $0x4dc] ss:$20 sps:$4 sm:$0xff]   ;;  %v4621_v11 = vld [vmem:[#allocation5 + $0x4e4] ss:$20 sps:$4 sm:$0xff]  }
 0x23b   :  { %2820 = vmatpush1.bf16.msra.mxu1 %v4538_v12  ;;  %2943 = vmatpush1.bf16.msra.mxu0 %v4541_v13  ;;  %v4616_v12 = vld [vmem:[#allocation5 + $0x4d8] ss:$20 sps:$4 sm:$0xff]   ;;  %v4619_v13 = vld [vmem:[#allocation5 + $0x4e0] ss:$20 sps:$4 sm:$0xff]  }
 0x23c   :  { %2821 = vmatprep.subr.bf16.mxu1 %v4546_v15  ;;  %2944 = vmatprep.subr.bf16.mxu0 %v4549_v14  ;;  %v4624_v15 = vld [vmem:[#allocation5 + $0x504] ss:$20 sps:$4 sm:$0xff]   ;;  %v4627_v14 = vld [vmem:[#allocation5 + $0x50c] ss:$20 sps:$4 sm:$0xff]  }
 0x23f   :  { %2822 = vmatpush1.bf16.msra.mxu1 %v4544_v17  ;;  %2945 = vmatpush1.bf16.msra.mxu0 %v4547_v19  ;;  %v4622_v17 = vld [vmem:[#allocation5 + $0x500] ss:$20 sps:$4 sm:$0xff]   ;;  %v4625_v19 = vld [vmem:[#allocation5 + $0x508] ss:$20 sps:$4 sm:$0xff]  }
 0x240   :  { %2823 = vmatprep.subr.bf16.mxu1 %v4552_v20  ;;  %2946 = vmatprep.subr.bf16.mxu0 %v4555_v21  ;;  %v5060_v20 = vpack.c.bf16 %v5042_v49, %v5042_v49  ;;  %v4630_v21 = vld [vmem:[#allocation5 + $0x52c] ss:$20 sps:$4 sm:$0xff]   ;;  %v4634_v49 = vld [vmem:[#allocation5 + $0x550] ss:$20 sps:$4 sm:$0xff]  }
 0x243   :  { %2824 = vmatpush1.bf16.msra.mxu1 %v4550_v22  ;;  %2947 = vmatpush1.bf16.msra.mxu0 %v4553_v23  ;;  %v4633_v22 = vld [vmem:[#allocation5 + $0x534] ss:$20 sps:$4 sm:$0xff]  }
 0x244   :  { %2825 = vmatprep.subr.bf16.mxu1 %v4558_v24  ;;  %2948 = vmatprep.subr.bf16.mxu0 %v4561_v25  ;;  %v4628_v23 = vld [vmem:[#allocation5 + $0x528] ss:$20 sps:$4 sm:$0xff]   ;;  %v4631_v24 = vld [vmem:[#allocation5 + $0x530] ss:$20 sps:$4 sm:$0xff]  }
 0x245   :  { %v4636_v25 = vld [vmem:[#allocation5 + $0x554] ss:$20 sps:$4 sm:$0xff]  }
 0x247   :  { %2826 = vmatpush1.bf16.msra.mxu1 %v4556_v26  ;;  %2949 = vmatpush1.bf16.msra.mxu0 %v4559_v27  ;;  %v4639_v26 = vld [vmem:[#allocation5 + $0x55c] ss:$20 sps:$4 sm:$0xff]   ;;  %v4637_v27 = vld [vmem:[#allocation5 + $0x558] ss:$20 sps:$4 sm:$0xff]  }
 0x248   :  { %2827 = vmatprep.subr.bf16.mxu1 %v4564_v28  ;;  %2950 = vmatprep.subr.bf16.mxu0 %v4567_v29  ;;  %v4642_v28 = vld [vmem:[#allocation5 + $0x57c] ss:$20 sps:$4 sm:$0xff]   ;;  %v4645_v29 = vld [vmem:[#allocation5 + $0x584] ss:$20 sps:$4 sm:$0xff]  }
 0x24b   :  { %2828 = vmatpush1.bf16.msra.mxu1 %v4562_v30  ;;  %2951 = vmatpush1.bf16.msra.mxu0 %v4565_v31  ;;  %v4640_v30 = vld [vmem:[#allocation5 + $0x578] ss:$20 sps:$4 sm:$0xff]   ;;  %v4643_v31 = vld [vmem:[#allocation5 + $0x580] ss:$20 sps:$4 sm:$0xff]  }
 0x24c   :  { %2829 = vmatprep.subr.bf16.mxu1 %v4570_v32  ;;  %2952 = vmatprep.subr.bf16.mxu0 %v4573_v33  ;;  %v4648_v32 = vld [vmem:[#allocation5 + $0x5a4] ss:$20 sps:$4 sm:$0xff]   ;;  %v4651_v33 = vld [vmem:[#allocation5 + $0x5ac] ss:$20 sps:$4 sm:$0xff]  }
 0x24f   :  { %2830 = vmatpush1.bf16.msra.mxu1 %v4568_v34  ;;  %2953 = vmatpush1.bf16.msra.mxu0 %v4571_v35  ;;  %v4646_v34 = vld [vmem:[#allocation5 + $0x5a0] ss:$20 sps:$4 sm:$0xff]  }
 0x250   :  { %2831 = vmatprep.subr.bf16.mxu1 %v4576_v37  ;;  %2954 = vmatprep.subr.bf16.mxu0 %v4579_v38  ;;  %v4654_v35 = vld [vmem:[#allocation5 + $0x5cc] ss:$20 sps:$4 sm:$0xff]   ;;  %v4657_v37 = vld [vmem:[#allocation5 + $0x5d4] ss:$20 sps:$4 sm:$0xff]  }
 0x251   :  { %v4652_v38 = vld [vmem:[#allocation5 + $0x5c8] ss:$20 sps:$4 sm:$0xff]  }
 0x253   :  { %2832 = vmatpush1.bf16.msra.mxu1 %v4574_v39  ;;  %2955 = vmatpush1.bf16.msra.mxu0 %v4577_v40  ;;  %v4655_v39 = vld [vmem:[#allocation5 + $0x5d0] ss:$20 sps:$4 sm:$0xff]   ;;  %v4660_v40 = vld [vmem:[#allocation5 + $0x5f4] ss:$20 sps:$4 sm:$0xff]  }
 0x254   :  { %2833 = vmatprep.subr.bf16.mxu1 %v4582_v41  ;;  %2956 = vmatprep.subr.bf16.mxu0 %v4585_v42  ;;  %v4663_v41 = vld [vmem:[#allocation5 + $0x5fc] ss:$20 sps:$4 sm:$0xff]  }
 0x255   :  { %v4658_v42 = vld [vmem:[#allocation5 + $0x5f0] ss:$20 sps:$4 sm:$0xff]  }
 0x257   :  { %2834 = vmatpush1.bf16.msra.mxu1 %v4580_v36  ;;  %2957 = vmatpush1.bf16.msra.mxu0 %v4583_v43  ;;  %v4661_v36 = vld [vmem:[#allocation5 + $0x5f8] ss:$20 sps:$4 sm:$0xff]   ;;  %v4666_v43 = vld [vmem:[#allocation5 + $0x61c] ss:$20 sps:$4 sm:$0xff]  }
 0x258   :  { %2835 = vmatprep.subr.bf16.mxu1 %v4588_v44  ;;  %2958 = vmatprep.subr.bf16.mxu0 %v4591_v45  ;;  %v4669_v44 = vld [vmem:[#allocation5 + $0x624] ss:$20 sps:$4 sm:$0xff]  }
 0x259   :  { %v4664_v45 = vld [vmem:[#allocation5 + $0x618] ss:$20 sps:$4 sm:$0xff]  }
 0x25b   :  { %2836 = vmatpush1.bf16.msra.mxu1 %v4586_v46  ;;  %2959 = vmatpush1.bf16.msra.mxu0 %v4589_v47  ;;  %v4667_v46 = vld [vmem:[#allocation5 + $0x620] ss:$20 sps:$4 sm:$0xff]   ;;  %v4670_v47 = vld [vmem:[#allocation5 + $0x150] ss:$20 sps:$4 sm:$0xff]  }
 0x25c   :  { %2837 = vmatprep.subr.bf16.mxu1 %v4594_v48  ;;  %2960 = vmatprep.subr.bf16.mxu0 %v4597_v50  ;;  %v4671_v48 = vld [vmem:[#allocation5 + $0x3d0] ss:$20 sps:$4 sm:$0xff]  }
 0x25d   :  { %v4672_v50 = vld [vmem:[#allocation5 + $0x10] ss:$20 sps:$4 sm:$0xff]  }
 0x25f   :  { %2838 = vmatpush1.bf16.msra.mxu1 %v4592_v52  ;;  %2961 = vmatpush1.bf16.msra.mxu0 %v4595_v54  ;;  %v5068_v52 = vpack.c.bf16 %v5054_v9, %v5054_v9  ;;  %v4673_v54 = vld [vmem:[#allocation5 + $0x290] ss:$20 sps:$4 sm:$0xff]   ;;  %v4679_v9 = vld [vmem:[#allocation5 + $0x420] ss:$20 sps:$4 sm:$0xff]  }
 0x260   :  { %2839 = vmatprep.subr.bf16.mxu1 %v4600_v55  ;;  %2962 = vmatprep.subr.bf16.mxu0 %v4603_v56  ;;  %v4674_v55 = vld [vmem:[#allocation5 + $0x178] ss:$20 sps:$4 sm:$0xff]  }
 0x261   :  { %v4675_v56 = vld [vmem:[#allocation5 + $0x3f8] ss:$20 sps:$4 sm:$0xff]  }
 0x263   :  { %2840 = vmatpush1.bf16.msra.mxu1 %v4598_v58  ;;  %2963 = vmatpush1.bf16.msra.mxu0 %v4601_v60  ;;  %v4676_v58 = vld [vmem:[#allocation5 + $0x38] ss:$20 sps:$4 sm:$0xff]  }
 0x264   :  { %2841 = vmatprep.subr.bf16.mxu1 %v4606_v61  ;;  %2964 = vmatprep.subr.bf16.mxu0 %v4609_v62  ;;  %v4677_v60 = vld [vmem:[#allocation5 + $0x2b8] ss:$20 sps:$4 sm:$0xff]   ;;  %v4678_v61 = vld [vmem:[#allocation5 + $0x1a0] ss:$20 sps:$4 sm:$0xff]  }
 0x265   :  { %v4680_v62 = vld [vmem:[#allocation5 + $0x60] ss:$20 sps:$4 sm:$0xff]  }
 0x267   :  { %2842 = vmatpush1.bf16.msra.mxu1 %v4604_v2  ;;  %2965 = vmatpush1.bf16.msra.mxu0 %v4607_v4  ;;  %v4681_v2 = vld [vmem:[#allocation5 + $0x2e0] ss:$20 sps:$4 sm:$0xff]   ;;  %v4682_v4 = vld [vmem:[#allocation5 + $0x1c8] ss:$20 sps:$4 sm:$0xff]  }
 0x268   :  { %2843 = vmatprep.subr.bf16.mxu1 %v4612_v5  ;;  %2966 = vmatprep.subr.bf16.mxu0 %v4615_v6  ;;  %v4683_v5 = vld [vmem:[#allocation5 + $0x448] ss:$20 sps:$4 sm:$0xff]  }
 0x269   :  { %v4684_v6 = vld [vmem:[#allocation5 + $0x88] ss:$20 sps:$4 sm:$0xff]  }
 0x26b   :  { %2844 = vmatpush1.bf16.msra.mxu1 %v4610_v7  ;;  %2967 = vmatpush1.bf16.msra.mxu0 %v4613_v8  ;;  %v4686_v7 = vld [vmem:[#allocation5 + $0x1f0] ss:$20 sps:$4 sm:$0xff]  }
 0x26c   :  { %2845 = vmatprep.subr.bf16.mxu1 %v4618_v10  ;;  %2968 = vmatprep.subr.bf16.mxu0 %v4621_v11  ;;  %v4688_v8 = vld [vmem:[#allocation5 + $0xb0] ss:$20 sps:$4 sm:$0xff]   ;;  %v4690_v11 = vld [vmem:[#allocation5 + $0x218] ss:$20 sps:$4 sm:$0xff]  }
 0x26d   :  { %v4689_v10 = vld [vmem:[#allocation5 + $0x330] ss:$20 sps:$4 sm:$0xff]  }
 0x26f   :  { %2846 = vmatpush1.bf16.msra.mxu1 %v4616_v12  ;;  %2969 = vmatpush1.bf16.msra.mxu0 %v4619_v13  ;;  %v4691_v12 = vld [vmem:[#allocation5 + $0x498] ss:$20 sps:$4 sm:$0xff]  }
 0x270   :  { %2856 = vmatprep.subr.bf16.mxu1 %v4624_v15  ;;  %2979 = vmatprep.subr.bf16.mxu0 %v4627_v14  ;;  %v4692_v13 = vld [vmem:[#allocation5 + $0xd8] ss:$20 sps:$4 sm:$0xff]   ;;  %v4694_v14 = vld [vmem:[#allocation5 + $0x240] ss:$20 sps:$4 sm:$0xff]  }
 0x271   :  { %v4693_v15 = vld [vmem:[#allocation5 + $0x358] ss:$20 sps:$4 sm:$0xff]  }
 0x272   :  { %2848 = vmatmul.mubr.bf16.vlgmr.msra.gmra.mrb[16].mxu1 %v5060_v20  ;;  %2971 = vmatmul.mubr.bf16.vlgmr.msra.gmra.mrb[20].mxu0 %v5060_v20 }
 0x273   :  { %2857 = vmatpush1.bf16.msra.mxu1 %v4622_v17  ;;  %2980 = vmatpush1.bf16.msra.mxu0 %v4625_v19  ;;  %v4695_v17 = vld [vmem:[#allocation5 + $0x4c0] ss:$20 sps:$4 sm:$0xff]  }
 0x274   :  { %2858 = vmatprep.subr.bf16.mxu1 %v4630_v21  ;;  %2981 = vmatprep.subr.bf16.mxu0 %v4633_v22  ;;  %v4696_v19 = vld [vmem:[#allocation5 + $0x100] ss:$20 sps:$4 sm:$0xff]   ;;  %v4698_v22 = vld [vmem:[#allocation5 + $0x268] ss:$20 sps:$4 sm:$0xff]  }
 0x275   :  { %2888 = vmatprep.mubr.bf16.mxu1 %v4826_v0  ;;  %3011 = vmatprep.mubr.bf16.mxu0 %v4826_v0  ;;  %v4649_v0 = vld [vmem:[#allocation5 + $0x5a8] ss:$20 sps:$4 sm:$0xff]   ;;  %v4697_v21 = vld [vmem:[#allocation5 + $0x380] ss:$20 sps:$4 sm:$0xff]  }
 0x277   :  { %2859 = vmatpush1.bf16.msra.mxu1 %v4628_v23  ;;  %2982 = vmatpush1.bf16.msra.mxu0 %v4631_v24  ;;  %v4699_v23 = vld [vmem:[#allocation5 + $0x4e8] ss:$20 sps:$4 sm:$0xff]  }
 0x278   :  { %2860 = vmatprep.subr.bf16.mxu1 %v4636_v25  ;;  %2983 = vmatprep.subr.bf16.mxu0 %v4639_v26  ;;  %v4700_v24 = vld [vmem:[#allocation5 + $0x128] ss:$20 sps:$4 sm:$0xff]   ;;  %v4710_v26 = vld [vmem:[%s5258_s10 + $0x40] sm:$0xff]  }
 0x279   :  { %v4701_v25 = vld [vmem:[#allocation5 + $0x3a8] ss:$20 sps:$4 sm:$0xff]  }
 0x27b   :  { %2861 = vmatpush1.bf16.msra.mxu1 %v4634_v49  ;;  %2984 = vmatpush1.bf16.msra.mxu0 %v4637_v27  ;;  %v4702_v49 = vld [vmem:[#allocation5 + $0x510] ss:$20 sps:$4 sm:$0xff]  }
 0x27c   :  { %2862 = vmatprep.subr.bf16.mxu1 %v4642_v28  ;;  %2985 = vmatprep.subr.bf16.mxu0 %v4645_v29  ;;  %v4712_v27 = vld [vmem:[%s5258_s10] sm:$0xff]   ;;  %v4714_v28 = vld [vmem:[%s5258_s10 + $0x48] sm:$0xff]  }
 0x27d   :  { %v4703_v29 = vld [vmem:[#allocation5 + $0x538] ss:$20 sps:$4 sm:$0xff]  }
 0x27f   :  { %2863 = vmatpush1.bf16.msra.mxu1 %v4640_v30  ;;  %2986 = vmatpush1.bf16.msra.mxu0 %v4643_v31  ;;  %v4716_v30 = vld [vmem:[%s5258_s10 + $0x8] sm:$0xff]   ;;  %v4704_v31 = vld [vmem:[#allocation5 + $0x560] ss:$20 sps:$4 sm:$0xff]  }
 0x280   :  { %2864 = vmatprep.subr.bf16.mxu1 %v4648_v32  ;;  %2987 = vmatprep.subr.bf16.mxu0 %v4651_v33  ;;  %v4722_v32 = vld [vmem:[%s5258_s10 + $0x58] sm:$0xff]  }
 0x281   :  { %v4705_v33 = vld [vmem:[#allocation5 + $0x588] ss:$20 sps:$4 sm:$0xff]  }
 0x283   :  { %2865 = vmatpush1.bf16.msra.mxu1 %v4646_v34  ;;  %2988 = vmatpush1.bf16.msra.mxu0 %v4649_v0  ;;  %v4724_v34 = vld [vmem:[%s5258_s10 + $0x18] sm:$0xff]   ;;  %v4726_v0 = vld [vmem:[%s5258_s10 + $0x60] sm:$0xff]  }
 0x284   :  { %2866 = vmatprep.subr.bf16.mxu1 %v4654_v35  ;;  %2989 = vmatprep.subr.bf16.mxu0 %v4657_v37  ;;  %v4706_v35 = vld [vmem:[#allocation5 + $0x5b0] ss:$20 sps:$4 sm:$0xff]  }
 0x285   :  { %v4728_v37 = vld [vmem:[%s5258_s10 + $0x20] sm:$0xff]  }
 0x287   :  { %2867 = vmatpush1.bf16.msra.mxu1 %v4652_v38  ;;  %2990 = vmatpush1.bf16.msra.mxu0 %v4655_v39  ;;  %v4730_v38 = vld [vmem:[%s5258_s10 + $0x68] sm:$0xff]  }
 0x288   :  { %2868 = vmatprep.subr.bf16.mxu1 %v4660_v40  ;;  %2991 = vmatprep.subr.bf16.mxu0 %v4663_v41  ;;  %v4707_v39 = vld [vmem:[#allocation5 + $0x5d8] ss:$20 sps:$4 sm:$0xff]   ;;  %v4708_v41 = vld [vmem:[#allocation5 + $0x600] ss:$20 sps:$4 sm:$0xff]  }
 0x289   :  { %v4732_v40 = vld [vmem:[%s5258_s10 + $0x28] sm:$0xff]  }
 0x28b   :  { %2869 = vmatpush1.bf16.msra.mxu1 %v4658_v42  ;;  %2992 = vmatpush1.bf16.msra.mxu0 %v4661_v36  ;;  %v4709_v42 = vld [vmem:[#allocation5 + $0x628] ss:$20 sps:$4 sm:$0xff]   ;;  %v4711_v36 = vld [vmem:[%s5258_s10 + $0xc0] sm:$0xff]  }
 0x28c   :  { %2870 = vmatprep.subr.bf16.mxu1 %v4666_v43  ;;  %2993 = vmatprep.subr.bf16.mxu0 %v4669_v44  ;;  %v4713_v43 = vld [vmem:[%s5258_s10 + $0x80] sm:$0xff]   ;;  %v4715_v44 = vld [vmem:[%s5258_s10 + $0xc8] sm:$0xff]  }
 0x28f   :  { %2871 = vmatpush1.bf16.msra.mxu1 %v4664_v45  ;;  %2994 = vmatpush1.bf16.msra.mxu0 %v4667_v46  ;;  %v4717_v45 = vld [vmem:[%s5258_s10 + $0x88] sm:$0xff]   ;;  %v4719_v46 = vld [vmem:[%s5258_s10 + $0xd0] sm:$0xff]  }
 0x290   :  { %4027 = vmatprep.subr.bf16.mxu1 %v4670_v47  ;;  %4049 = vmatprep.subr.bf16.mxu0 %v4671_v48  ;;  %v4721_v47 = vld [vmem:[%s5258_s10 + $0x90] sm:$0xff]   ;;  %v4723_v48 = vld [vmem:[%s5258_s10 + $0xd8] sm:$0xff]  }
 0x292   :  { %2889 = vmatmul.mubr.bf16.vlgmr.msra.gmra.mrb[16].mxu1 %v5068_v52  ;;  %3012 = vmatmul.mubr.bf16.vlgmr.msra.gmra.mrb[20].mxu0 %v5068_v52 }
 0x293   :  { %4028 = vmatpush3.bf16.msra.mxu1 %v4672_v50  ;;  %3052 = vmatprep.mubr.bf16.mxu1 %v5044_v53  ;;  %v4685_v53 = vld [vmem:[#allocation5 + $0x308] ss:$20 sps:$4 sm:$0xff]  }
 0x294   :  { %4050 = vmatpush3.bf16.msra.mxu0 %v4673_v54  ;;  %3092 = vmatprep.mubr.bf16.mxu0 %v5050_v3  ;;  %v4687_v3 = vld [vmem:[#allocation5 + $0x470] ss:$20 sps:$4 sm:$0xff]   ;;  %v4725_v50 = vld [vmem:[%s5258_s10 + $0x98] sm:$0xff]  }
 0x295   :  { %4029 = vmatprep.subr.bf16.mxu1 %v4674_v55  ;;  %4051 = vmatprep.subr.bf16.mxu0 %v4675_v56  ;;  %v4729_v54 = vld [vmem:[%s5258_s10 + $0xa0] sm:$0xff]   ;;  %v4731_v55 = vld [vmem:[%s5258_s10 + $0xe8] sm:$0xff]  }
 0x296   :  { %v4733_v56 = vld [vmem:[%s5258_s10 + $0xa8] sm:$0xff]  }
 0x297   :  { %4030 = vmatpush3.bf16.msra.mxu1 %v4676_v58  ;;  %v4734_v58 = vld [vmem:[%s5258_s10 + $0x70] sm:$0xff]  }
 0x298   :  { %4052 = vmatpush3.bf16.msra.mxu0 %v4677_v60  ;;  %4031 = vmatprep.subr.bf16.mxu1 %v4678_v61  ;;  %v4735_v60 = vld [vmem:[%s5258_s10 + $0xf0] sm:$0xff]  }
 0x299   :  { %4053 = vmatprep.subr.bf16.mxu0 %v4679_v9  ;;  %v4736_v61 = vld [vmem:[%s5258_s10 + $0x30] sm:$0xff]  }
 0x29a   :  { %v4737_v9 = vld [vmem:[%s5258_s10 + $0xb0] sm:$0xff]  }
 0x29b   :  { %4032 = vmatpush3.bf16.msra.mxu1 %v4680_v62  ;;  %v4738_v62 = vld [vmem:[%s5258_s10 + $0x78] sm:$0xff]  }
 0x29c   :  { %4054 = vmatpush3.bf16.msra.mxu0 %v4681_v2  ;;  %4033 = vmatprep.subr.bf16.mxu1 %v4682_v4  ;;  %v4739_v2 = vld [vmem:[%s5258_s10 + $0xf8] sm:$0xff]  }
 0x29d   :  { %4055 = vmatprep.subr.bf16.mxu0 %v4683_v5  ;;  %v4740_v4 = vld [vmem:[%s5258_s10 + $0x38] sm:$0xff]  }
 0x29e   :  { %v4741_v5 = vld [vmem:[%s5258_s10 + $0xb8] sm:$0xff]  }
 0x29f   :  { %4034 = vmatpush3.bf16.msra.mxu1 %v4684_v6  ;;  %v5187_v6 = vld [vmem:[%s5257_s9] sm:$0x1f] }
 0x2a0   :  { %4056 = vmatpush3.bf16.msra.mxu0 %v4685_v53  ;;  %4035 = vmatprep.subr.bf16.mxu1 %v4686_v7  ;;  %v1712_v53 = vrot.slane %v5187_v6, %v4948_v16  ;;  %v1720_v7 = vrot.slane %v5187_v6, %v4973_v51 }
 0x2a1   :  { %4057 = vmatprep.subr.bf16.mxu0 %v4687_v3  ;;  %v1716_v3 = vrot.slane %v5187_v6, %v4956_v18 }
 0x2a3   :  { %4036 = vmatpush3.bf16.msra.mxu1 %v4688_v8  ;;  %v1724_v8 = vrot.slane %v5187_v6, %v5028_v63  ;;  %v4742_v63 = vld [vmem:[%s5258_s10 + $0x100] sm:$0xff]  }
 0x2a4   :  { %4058 = vmatpush3.bf16.msra.mxu0 %v4689_v10  ;;  %4037 = vmatprep.subr.bf16.mxu1 %v4690_v11 }
 0x2a5   :  { %4059 = vmatprep.subr.bf16.mxu0 %v4691_v12 }
 0x2a7   :  { %4038 = vmatpush3.bf16.msra.mxu1 %v4692_v13 }
 0x2a8   :  { %4060 = vmatpush3.bf16.msra.mxu0 %v4693_v15  ;;  %4039 = vmatprep.subr.bf16.mxu1 %v4694_v14 }
 0x2a9   :  { %4061 = vmatprep.subr.bf16.mxu0 %v4695_v17 }
 0x2ab   :  { %4040 = vmatpush3.bf16.msra.mxu1 %v4696_v19 }
 0x2ac   :  { %4062 = vmatpush3.bf16.msra.mxu0 %v4697_v21  ;;  %4041 = vmatprep.subr.bf16.mxu1 %v4698_v22 }
 0x2ad   :  { %4063 = vmatprep.subr.bf16.mxu0 %v4699_v23 }
 0x2af   :  { %4042 = vmatpush3.bf16.msra.mxu1 %v4700_v24 }
 0x2b0   :  { %4064 = vmatpush3.bf16.msra.mxu0 %v4701_v25  ;;  %4167 = vmatprep.subr.bf16.mxu1 %v4827_v1 }
 0x2b1   :  { %4080 = vmatprep.subr.bf16.mxu0 %v4710_v26 }
 0x2b2   :  { %3053 = vmatmul.mubr.bf16.vlgmr.msra.gmra.mrb[20].mxu1 %v5046_v57  ;;  %v4718_v57 = vld [vmem:[%s5258_s10 + $0x50] sm:$0xff]  }
 0x2b3   :  { %3093 = vmatmul.mubr.bf16.vlgmr.msra.gmra.mrb[24].mxu0 %v5060_v20  ;;  %4168 = vmatpush3.bf16.msra.mxu1 %v4702_v49  ;;  %v4720_v20 = vld [vmem:[%s5258_s10 + $0x10] sm:$0xff]  }
 0x2b4   :  { %4169 = vmatprep.subr.bf16.mxu1 %v4827_v1  ;;  %4183 = vmatprep.mubr.msk.bf16.mxu1 %vm4828_vm0, %v4827_v1 }
 0x2b5   :  { %4081 = vmatpush3.bf16.msra.mxu0 %v4712_v27 }
 0x2b6   :  { %4082 = vmatprep.subr.bf16.mxu0 %v4714_v28 }
 0x2b7   :  { %4170 = vmatpush3.bf16.msra.mxu1 %v4703_v29  ;;  %v4743_v29 = vld [vmem:[%s5258_s10 + $0x108] sm:$0xff]  }
 0x2b8   :  { %4171 = vmatprep.subr.bf16.mxu1 %v4827_v1 }
 0x2b9   :  { %4083 = vmatpush3.bf16.msra.mxu0 %v4716_v30  ;;  %v4744_v30 = vld [vmem:[%s5258_s10 + $0x110] sm:$0xff]  }
 0x2ba   :  { %4084 = vmatprep.subr.bf16.mxu0 %v4718_v57  ;;  %v4745_v57 = vld [vmem:[%s5258_s10 + $0x118] sm:$0xff]  }
 0x2bb   :  { %4172 = vmatpush3.bf16.msra.mxu1 %v4704_v31  ;;  %v4746_v31 = vld [vmem:[%s5258_s10 + $0x120] sm:$0xff]  }
 0x2bc   :  { %4173 = vmatprep.subr.bf16.mxu1 %v4827_v1 }
 0x2bd   :  { %4085 = vmatpush3.bf16.msra.mxu0 %v4720_v20  ;;  %v4747_v20 = vld [vmem:[%s5258_s10 + $0x128] sm:$0xff]  }
 0x2be   :  { %4086 = vmatprep.subr.bf16.mxu0 %v4722_v32  ;;  %v4748_v32 = vld [vmem:[%s5258_s10 + $0x130] sm:$0xff]  }
 0x2bf   :  { %4174 = vmatpush3.bf16.msra.mxu1 %v4705_v33 }
 0x2c0   :  { %4175 = vmatprep.subr.bf16.mxu1 %v4827_v1 }
 0x2c1   :  { %4087 = vmatpush3.bf16.msra.mxu0 %v4724_v34  ;;  %v1728_v34 = vrot.slane %v5187_v6, %v5021_v59 }
 0x2c2   :  { %4088 = vmatprep.subr.bf16.mxu0 %v4726_v0 }
 0x2c3   :  { %4176 = vmatpush3.bf16.msra.mxu1 %v4706_v35 }
 0x2c4   :  { %4177 = vmatprep.subr.bf16.mxu1 %v4827_v1 }
 0x2c5   :  { %4089 = vmatpush3.bf16.msra.mxu0 %v4728_v37 }
 0x2c6   :  { %4090 = vmatprep.subr.bf16.mxu0 %v4730_v38 }
 0x2c7   :  { %4178 = vmatpush3.bf16.msra.mxu1 %v4707_v39 }
 0x2c8   :  { %4179 = vmatprep.subr.bf16.mxu1 %v4827_v1 }
 0x2c9   :  { %4091 = vmatpush3.bf16.msra.mxu0 %v4732_v40  ;;  %v4749_v40 = vld [vmem:[%s5258_s10 + $0x138] sm:$0xff]  }
 0x2ca   :  { %4092 = vmatprep.subr.bf16.mxu0 %v4734_v58  ;;  %v3950_v58 = vld [vmem:[%s5259_s11] ss:$0 sm:$0xff]  ;;  %s4794_s11 = scalar_lea.vmem %s3605_s16, 128 }
 0x2cb   :  { %4180 = vmatpush3.bf16.msra.mxu1 %v4708_v41  ;;  %p4795_p2 = scmp.ne.s32.totalorder %s3605_s16, %s4794_s11  ;;  %p4800_p4 = scmp.lt.s32.totalorder %s4794_s11, %s4794_s11 }
 0x2cc   :  { %4181 = vmatprep.subr.bf16.mxu1 %v4827_v1 }
 0x2cd   :  { %4093 = vmatpush3.bf16.msra.mxu0 %v4736_v61  ;;  %p4801_p5 = por %p4800_p4, %p4799_p3 }
 0x2ce   :  { %4094 = vmatprep.subr.bf16.mxu0 %v4738_v62 }
 0x2cf   :  { %4182 = vmatpush3.bf16.msra.mxu1 %v4709_v42  ;;  %p4802_p6 = pnand %p4801_p5, %p4795_p2 }
 0x2d0   :  { %4102 = vmatprep.subr.bf16.mxu1 %v4711_v36 }
 0x2d1   :  { %4095 = vmatpush3.bf16.msra.mxu0 %v4740_v4 }
 0x2d2   :  { %4184 = vmatmul.mubr.bf16.vlgmr.msra.gmra.mrb[24].mxu1 %v5068_v52  ;;  %v4727_v52 = vld [vmem:[%s5258_s10 + $0xe0] sm:$0xff]   ;;  %4187 = vmatprep.subr.bf16.mxu0 %v4827_v1 }
 0x2d3   :  { %4103 = vmatpush3.bf16.msra.mxu1 %v4713_v43 }
 0x2d4   :  { %4104 = vmatprep.subr.bf16.mxu1 %v4715_v44 }
 0x2d7   :  { %4105 = vmatpush3.bf16.msra.mxu1 %v4717_v45 }
 0x2d8   :  { %4106 = vmatprep.subr.bf16.mxu1 %v4719_v46 }
 0x2db   :  { %4107 = vmatpush3.bf16.msra.mxu1 %v4721_v47 }
 0x2dc   :  { %4108 = vmatprep.subr.bf16.mxu1 %v4723_v48 }
 0x2df   :  { %4109 = vmatpush3.bf16.msra.mxu1 %v4725_v50 }
 0x2e0   :  { %4110 = vmatprep.subr.bf16.mxu1 %v4727_v52 }
 0x2e3   :  { %4111 = vmatpush3.bf16.msra.mxu1 %v4729_v54 }
 0x2e4   :  { %4112 = vmatprep.subr.bf16.mxu1 %v4731_v55 }
 0x2e7   :  { %4113 = vmatpush3.bf16.msra.mxu1 %v4733_v56 }
 0x2e8   :  { %4114 = vmatprep.subr.bf16.mxu1 %v4735_v60 }
 0x2eb   :  { %4115 = vmatpush3.bf16.msra.mxu1 %v4737_v9 }
 0x2ec   :  { %4116 = vmatprep.subr.bf16.mxu1 %v4739_v2 }
 0x2ef   :  { %4117 = vmatpush3.bf16.msra.mxu1 %v4741_v5 }
 0x365   :  { %v2890_v10 = vpop.f32.mrb[16].mxu1  ;;  %v3013_v11 = vpop.f32.mrb[20].mxu0 }
 0x366   :  { %v4211_v12 = vadd.f32 %v2890_v10, %v1712_v53  ;;  %v4213_v13 = vadd.f32 %v3013_v11, %v1720_v7  ;;  %v2892_v15 = vpop.f32.mrb[17].mxu1  ;;  %v3015_v14 = vpop.f32.mrb[21].mxu0 }
 0x367   :  { %v4212_v17 = vadd.f32 %v2892_v15, %v1716_v3  ;;  %v4214_v19 = vadd.f32 %v3015_v14, %v1724_v8  ;;  %v2894_v21 = vpop.f32.mrb[18].mxu1  ;;  %v3017_v22 = vpop.f32.mrb[22].mxu0 }
 0x368   :  { %v3140_v16 = vmax.f32 %v4211_v12, 0.0  ;;  %v3142_v23 = vmax.f32 %v4213_v13, 0.0  ;;  %v2895_v24 = vpop.f32.mrb[19].mxu1  ;;  %v3018_v51 = vpop.f32.mrb[23].mxu0 }
 0x369   :  { %v3141_v25 = vmax.f32 %v4212_v17, 0.0  ;;  %v3143_v26 = vmax.f32 %v4214_v19, 0.0 }
 0x36a   :  { %v3145_v27 = vpack.c.bf16 %v3140_v16, %v3140_v16  ;;  %v3147_v28 = vpack.c.bf16 %v3142_v23, %v3142_v23 }
 0x36b   :  { %v3146_v18 = vpack.c.bf16 %v3141_v25, %v3141_v25  ;;  %v3148_v49 = vpack.c.bf16 %v3143_v26, %v3143_v26 }
 0x36d   :  { %3509 = vmatprep.mubr.bf16.mxu0 %v3146_v18  ;;  %3549 = vmatprep.mubr.bf16.mxu1 %v3148_v49 }
 0x36e   :  { %3510 = vmatmul.mubr.bf16.vlgmr.msra.gmra.mrb[28].mxu0 %v3145_v27  ;;  %3550 = vmatmul.mubr.bf16.vlgmr.msra.gmra.mrb[28].mxu1 %v3147_v28 }
 0x36f   :  { %4188 = vmatpush3.bf16.msra.mxu0 %v4742_v63  ;;  %4203 = vmatprep.mubr.msk.bf16.mxu0 %vm4828_vm0, %v4827_v1 }
 0x370   :  { %4189 = vmatprep.subr.bf16.mxu0 %v4827_v1 }
 0x373   :  { %4190 = vmatpush3.bf16.msra.mxu0 %v4743_v29 }
 0x374   :  { %4191 = vmatprep.subr.bf16.mxu0 %v4827_v1 }
 0x377   :  { %4192 = vmatpush3.bf16.msra.mxu0 %v4744_v30 }
 0x378   :  { %4193 = vmatprep.subr.bf16.mxu0 %v4827_v1 }
 0x37b   :  { %4194 = vmatpush3.bf16.msra.mxu0 %v4745_v57 }
 0x37c   :  { %4195 = vmatprep.subr.bf16.mxu0 %v4827_v1 }
 0x37f   :  { %4196 = vmatpush3.bf16.msra.mxu0 %v4746_v31 }
 0x380   :  { %4197 = vmatprep.subr.bf16.mxu0 %v4827_v1 }
 0x383   :  { %4198 = vmatpush3.bf16.msra.mxu0 %v4747_v20 }
 0x384   :  { %4199 = vmatprep.subr.bf16.mxu0 %v4827_v1 }
 0x385   :  { %v4043_v33 = vpop.f32.mrb[20].mxu1 }
 0x386   :  { %v4065_v0 = vpop.f32.mrb[24].mxu0  ;;  %v4044_v35 = vpop.f32.mrb[21].mxu1 }
 0x387   :  { %v4045_v37 = vadd.f32 %v4044_v35, %v4043_v33  ;;  %v4066_v38 = vpop.f32.mrb[25].mxu0  ;;  %v4046_v39 = vpop.f32.mrb[22].mxu1  ;;  %4200 = vmatpush3.bf16.msra.mxu0 %v4748_v32 }
 0x388   :  { %v4067_v41 = vadd.f32 %v4066_v38, %v4065_v0  ;;  %v4068_v42 = vpop.f32.mrb[26].mxu0  ;;  %v4047_v36 = vpop.f32.mrb[23].mxu1  ;;  %4201 = vmatprep.subr.bf16.mxu0 %v4827_v1 }
 0x389   :  { %v3055_v43 = vadd.f32 %v4045_v37, %v1728_v34  ;;  %v4069_v44 = vpop.f32.mrb[27].mxu0 }
 0x38b   :  { %v3095_v45 = vadd.f32 %v4067_v41, %v3055_v43  ;;  %4202 = vmatpush3.bf16.msra.mxu0 %v4749_v40 }
 0x3a5   :  { %v3134_v59 = vpop.f32.mrb[24].mxu1 }
 0x3a6   :  { %v3135_v46 = vadd.f32 %v3134_v59, %v3095_v45  ;;  %v4185_v47 = vpop.f32.mrb[25].mxu1 }
 0x3a7   :  { %v3137_v48 = vpop.f32.mrb[26].mxu1 }
 0x3a8   :  { %v3144_v50 = vmax.f32 %v3135_v46, 0.0  ;;  %v4186_v52 = vpop.f32.mrb[27].mxu1 }
 0x3aa   :  { %v3149_v54 = vpack.c.bf16 %v3144_v50, %v3144_v50 }
 0x3ac   :  { %4204 = vmatmul.mubr.bf16.vlgmr.msra.gmra.mrb[32].mxu0 %v3149_v54 }
 0x441   :  { %v4096_v55 = vpop.f32.mrb[28].mxu0  ;;  %v4118_v56 = vpop.f32.mrb[28].mxu1 }
 0x442   :  { %v4097_v60 = vpop.f32.mrb[29].mxu0  ;;  %v4119_v1 = vpop.f32.mrb[29].mxu1 }
 0x443   :  { %v4098_v61 = vadd.f32 %v4097_v60, %v4096_v55  ;;  %v4120_v9 = vadd.f32 %v4119_v1, %v4118_v56  ;;  %v4099_v62 = vpop.f32.mrb[30].mxu0  ;;  %v4121_v2 = vpop.f32.mrb[30].mxu1 }
 0x444   :  { %v4100_v4 = vpop.f32.mrb[31].mxu0  ;;  %v4122_v5 = vpop.f32.mrb[31].mxu1 }
 0x445   :  { %v3512_v6 = vadd.f32 %v4098_v61, %v3950_v58 }
 0x447   :  { %v3552_v53 = vadd.f32 %v4120_v9, %v3512_v6 }
 0x47f   :  { %v3591_v7 = vpop.f32.mrb[32].mxu0 }
 0x480   :  { %v3592_v3 = vadd.f32 %v3591_v7, %v3552_v53  ;;  %v4205_v8 = vpop.f32.mrb[33].mxu0 }
 0x481   :  { %v3594_v10 = vpop.f32.mrb[34].mxu0 }
 0x482   :  { %3597 = vst.msk [vmem:[#allocation7] sm:$0xff] %vm1326_vm2, %v3592_v3  ;;  %v4206_v11 = vpop.f32.mrb[35].mxu0 }
 0x483   :  { %4805 = shalt.err (!%p4802_p6)
}
 0x484   :  { %s4806_s19 = scalar_lea.hbm %s5260_s12, 128 }
 0x485   :  { %p4807_p7 = scmp.ne.s32.totalorder %s5260_s12, %s4806_s19  ;;  %p4810_p8 = scmp.lt.u32.totalorder %s4806_s19, %s5260_s12 }
 0x487   :  { %p4812_p9 = pnand %p4810_p8, %p4807_p7 }
 0x489   :  { %4815 = shalt.err (!%p4812_p9)
}
 0x48a   :  { %3607 = dma.vmem_to_hbm [thread:$0]  %s3605_s16, 128, %s5260_s12, [#allocation4]  }
 0x48b   :  { %4820 = dma.done.wait [#allocation4], 128  }
 0x48c   :  { %4821 = vsyncadd [#allocation4], 4294967168 }
 0x48d   :  { %3611 = vsyncpa [#allocation3], 1 }
 0x48e   :  { %3612 = vsyncpa [#allocation6], 1 }
 0x48f   :  { %3613 = vsyncpa [#allocation4], 1 }

</bundles_post_ra>
